<compile_context>
chip_gen: v6e
topology: v6e:2x2x1
jax: 0.10.0
libtpu: 0.0.40
codegen_flags: <defaults>
</compile_context>

<pallas_src>
import functools

import jax
import jax.numpy as jnp
import numpy as np
from jax.experimental import pallas as pl
from jax.experimental.pallas import tpu as pltpu


def _round_up(x, m):
    return ((x + m - 1) // m) * m


def _pad_gate_axis(a, H, H_pad):
    """Pad each of the 4 PyTorch gate blocks [i,f,g,o] along the last axis H -> H_pad."""
    if H == H_pad:
        return a
    parts = jnp.split(a, 4, axis=-1)
    pad = [(0, 0)] * (a.ndim - 1) + [(0, H_pad - H)]
    return jnp.concatenate([jnp.pad(p, pad) for p in parts], axis=-1)


def _lstm_kernel(maxlen_ref,                    # SMEM (1,) int32  (scalar prefetch)
                 p_ref,                         # (Tt, Bt, Gp) bf16  precomputed x-projection + bias
                 whh_ref,                       # (Hp, Gp)     bf16  W_hh^T (grid-invariant)
                 lens_ref,                      # (Bt, 1)      int32
                 h0_ref, c0_ref,                # (Bt, Hp)     f32
                 out_ref,                       # (Tt, Bt, Hp) f32
                 hN_ref, cN_ref,                # (Bt, Hp)     f32 (resident accumulators)
                 h_sc, c_sc):                   # scratch (Bt, Hp) f32
    tb = pl.program_id(1)                       # time-block index (inner, sequential)
    Tt = p_ref.shape[0]
    Hp = h_sc.shape[-1]
    max_len = maxlen_ref[0]
    block_start = tb * Tt

    @pl.when(tb == 0)
    def _init():
        h_sc[...] = h0_ref[...]
        c_sc[...] = c0_ref[...]
        hN_ref[...] = h0_ref[...]
        cN_ref[...] = c0_ref[...]

    @pl.when(block_start >= max_len)
    def _all_pad():
        # Every timestep in this block is past max(lens): the module's appended
        # app_tensor region is a constant 1e-7.  Skip all recurrence compute.
        out_ref[...] = jnp.full(out_ref.shape, 1e-7, dtype=jnp.float32)

    @pl.when(block_start < max_len)
    def _compute():
        whh = whh_ref[...]                      # (Hp, Gp) bf16, loaded once per block
        lens = lens_ref[...]                    # (Bt, 1) int32
        h = h_sc[...]
        c = c_sc[...]
        hN = hN_ref[...]
        cN = cN_ref[...]
        # Tt is a static Python int -> this loop is fully unrolled at trace time.
        for s in range(Tt):
            t = block_start + s
            gates = (p_ref[s].astype(jnp.float32)
                     + jnp.dot(h.astype(jnp.bfloat16), whh,
                               preferred_element_type=jnp.float32))
            i = jax.nn.sigmoid(gates[:, 0 * Hp:1 * Hp])
            f = jax.nn.sigmoid(gates[:, 1 * Hp:2 * Hp])
            g = jnp.tanh(gates[:, 2 * Hp:3 * Hp])
            o = jax.nn.sigmoid(gates[:, 3 * Hp:4 * Hp])
            c = f * c + i * g
            h = o * jnp.tanh(c)

            valid = t < lens                    # (Bt, 1) bool
            pad_val = jnp.where(t < max_len, jnp.float32(0.0), jnp.float32(1e-7))
            out_ref[s] = jnp.where(valid, h, pad_val)
            # keep hidden/cell of the last *valid* timestep per batch row
            hN = jnp.where(valid, h, hN)
            cN = jnp.where(valid, c, cN)
        h_sc[...] = h
        c_sc[...] = c
        hN_ref[...] = hN
        cN_ref[...] = cN


@functools.partial(jax.jit, static_argnames=("time_block",))
def _sorted_lstm_impl(inputs, weight_ih, weight_hh, bias_ih, bias_hh,
                      lens, h0, c0, *, time_block=8):
    B, T, D = inputs.shape
    H = weight_hh.shape[1]          # weight_hh: (4H, H)
    f32, bf16 = jnp.float32, jnp.bfloat16

    Hp = _round_up(H, 128)          # lane-aligned hidden width
    Bp = _round_up(B, 8)            # sublane-aligned batch
    Gp = 4 * Hp
    Tt = max(1, min(int(time_block), T))
    Tp = _round_up(T, Tt)
    # Split batch into 2 independent blocks when large enough (lets the two
    # TensorCores on v7x / megacore work on separate recurrences).
    Bt = Bp // 2 if (Bp >= 16 and Bp % 16 == 0) else Bp
    nB, nT = Bp // Bt, Tp // Tt

    # --- 1) Input projection hoisted out of the recurrence: one big bf16 matmul.
    bias = (bias_ih + bias_hh).astype(f32)
    p = jnp.einsum("btd,dg->btg",
                   inputs.astype(bf16), weight_ih.T.astype(bf16),
                   preferred_element_type=f32) + bias[None, None, :]      # (B, T, 4H)
    p = _pad_gate_axis(p, H, Hp)                                          # (B, T, Gp)
    p = jnp.pad(p, ((0, Bp - B), (0, Tp - T), (0, 0)))
    p_tm = jnp.transpose(p, (1, 0, 2)).astype(bf16)                       # (Tp, Bp, Gp)

    # --- 2) Recurrent weight, gate-padded and zero-row-padded, bf16 for the MXU.
    whh_p = _pad_gate_axis(weight_hh.T.astype(f32), H, Hp)                # (H, Gp)
    whh_p = jnp.pad(whh_p, ((0, Hp - H), (0, 0))).astype(bf16)            # (Hp, Gp)

    lens_p = jnp.pad(lens.astype(jnp.int32), (0, Bp - B)).reshape(Bp, 1)
    h0_p = jnp.pad(h0.astype(f32), ((0, Bp - B), (0, Hp - H)))
    c0_p = jnp.pad(c0.astype(f32), ((0, Bp - B), (0, Hp - H)))
    max_len = jnp.max(lens).astype(jnp.int32).reshape(1)

    out_shapes = (
        jax.ShapeDtypeStruct((Tp, Bp, Hp), f32),   # per-step outputs (time-major)
        jax.ShapeDtypeStruct((Bp, Hp), f32),       # final hidden
        jax.ShapeDtypeStruct((Bp, Hp), f32),       # final cell
    )

    grid_spec = pltpu.PrefetchScalarGridSpec(
        num_scalar_prefetch=1,                     # max_len -> SMEM
        grid=(nB, nT),
        in_specs=[
            pl.BlockSpec((Tt, Bt, Gp), lambda b, t, ml: (t, b, 0)),   # P (x proj + bias)
            pl.BlockSpec((Hp, Gp),     lambda b, t, ml: (0, 0)),      # W_hh^T (invariant)
            pl.BlockSpec((Bt, 1),      lambda b, t, ml: (b, 0)),      # lens
            pl.BlockSpec((Bt, Hp),     lambda b, t, ml: (b, 0)),      # h0
            pl.BlockSpec((Bt, Hp),     lambda b, t, ml: (b, 0)),      # c0
        ],
        out_specs=(
            pl.BlockSpec((Tt, Bt, Hp), lambda b, t, ml: (t, b, 0)),
            pl.BlockSpec((Bt, Hp),     lambda b, t, ml: (b, 0)),      # resident accumulator
            pl.BlockSpec((Bt, Hp),     lambda b, t, ml: (b, 0)),      # resident accumulator
        ),
        scratch_shapes=[
            pltpu.VMEM((Bt, Hp), f32),             # running h
            pltpu.VMEM((Bt, Hp), f32),             # running c
        ],
    )

    # Only raise the scoped-VMEM limit when the estimated footprint needs it
    # (stay under v7x's 64 MiB physical VMEM).
    est_vmem = (2 * Tt * Bt * Gp * 2       # P block, double-buffered, bf16
                + 2 * Tt * Bt * Hp * 4     # out block, double-buffered, f32
                + 2 * Hp * Gp * 2          # W_hh^T (conservatively double-buffered), bf16
                + 8 * Bt * Hp * 4          # h0/c0/hN/cN blocks + h/c scratch, f32
                + 4 * Bt * 4)              # lens
    vmem_limit = None
    if est_vmem > 12 * (1 << 20):
        vmem_limit = min(int(est_vmem * 1.7) + (2 << 20), 60 * (1 << 20))

    out_tm, hN, cN = pl.pallas_call(
        _lstm_kernel,
        out_shape=out_shapes,
        grid_spec=grid_spec,
        compiler_params=pltpu.CompilerParams(
            dimension_semantics=("parallel", "arbitrary"),   # batch parallel, time sequential
            vmem_limit_bytes=vmem_limit),
    )(max_len, p_tm, whh_p, lens_p, h0_p, c0_p)

    encoder_outputs = jnp.transpose(out_tm, (1, 0, 2))[:B, :T, :H]   # (B, T, H)
    hidden = hN[:B, :H][None, :, :]                                  # (1, B, H)
    cell = cN[:B, :H][None, :, :]
    return encoder_outputs, (hidden, cell)


def sorted_lstm_forward(inputs, weight_ih, weight_hh, bias_ih, bias_hh,
                        input_lens=None, last_hidden=None, time_block=8):
    """Mirrors SortedLSTM.forward. inputs: (B, T, D) float32 (batch_first)."""
    B, T, D = inputs.shape
    H = weight_hh.shape[1]

    if input_lens is None:
        lens = jnp.full((B,), T, dtype=jnp.int32)
    else:
        lens = input_lens.astype(jnp.int32)

    if last_hidden is None:
        h0 = jnp.zeros((B, H), jnp.float32)
        c0 = jnp.zeros((B, H), jnp.float32)
    else:
        h0 = last_hidden[0][0].astype(jnp.float32)
        c0 = last_hidden[1][0].astype(jnp.float32)

    return _sorted_lstm_impl(inputs.astype(jnp.float32), weight_ih, weight_hh,
                             bias_ih, bias_hh, lens, h0, c0,
                             time_block=int(time_block))


def _reference_forward(inputs, weight_ih, weight_hh, bias_ih, bias_hh, lens):
    """Pure-JAX f32 reference replicating pack/pad LSTM semantics."""
    B, T, D = inputs.shape
    H = weight_hh.shape[1]
    h0 = jnp.zeros((B, H), jnp.float32)
    c0 = jnp.zeros((B, H), jnp.float32)

    def step(carry, x_t):
        h, c = carry
        gates = x_t @ weight_ih.T + bias_ih + h @ weight_hh.T + bias_hh
        i, f, g, o = jnp.split(gates, 4, axis=-1)
        i, f, o = jax.nn.sigmoid(i), jax.nn.sigmoid(f), jax.nn.sigmoid(o)
        g = jnp.tanh(g)
        c = f * c + i * g
        h = o * jnp.tanh(c)
        return (h, c), (h, c)

    _, (hs, cs) = jax.lax.scan(step, (h0, c0), jnp.transpose(inputs, (1, 0, 2)))
    t_idx = jnp.arange(T)[:, None, None]
    lens_b = lens[None, :, None]
    max_len = jnp.max(lens)
    out = jnp.where(t_idx < lens_b, hs,
                    jnp.where(t_idx < max_len, 0.0, 1e-7))
    out = jnp.transpose(out, (1, 0, 2))
    hN = hs[lens - 1, jnp.arange(B)]
    cN = cs[lens - 1, jnp.arange(B)]
    return out, (hN[None], cN[None])


if __name__ == "__main__":
    B, T, D, H = 4, 8, 16, 32

    key = jax.random.PRNGKey(0)
    k_x, k_wih, k_whh = jax.random.split(key, 3)

    # Parameters, initialized deterministically like SortedLSTM.reset_parameters():
    #   weight_ih_l0 ~ kaiming_normal_ (fan_in = D, gain = sqrt(2))
    #   weight_hh_l0 ~ orthogonal_ (orthonormal columns via QR)
    #   biases = 0
    weight_ih = jax.random.normal(k_wih, (4 * H, D), jnp.float32) * jnp.sqrt(2.0 / D)
    q, _ = jnp.linalg.qr(jax.random.normal(k_whh, (4 * H, H), jnp.float32))
    weight_hh = q.astype(jnp.float32)                      # (4H, H), orthonormal columns
    bias_ih = jnp.zeros((4 * H,), jnp.float32)
    bias_hh = jnp.zeros((4 * H,), jnp.float32)

    inputs = jax.random.normal(k_x, (B, T, D), jnp.float32)
    input_lens = jnp.array([6, 5, 3, 2], dtype=jnp.int32)  # max < T -> exercises 0 and 1e-7 pads

    enc_out, (hidden, cell) = sorted_lstm_forward(
        inputs, weight_ih, weight_hh, bias_ih, bias_hh, input_lens=input_lens)
    jax.block_until_ready((enc_out, hidden, cell))

    # sanity check against a pure-JAX f32 reference (kernel matmuls are bf16 ->
    # tolerances relaxed accordingly)
    ref_out, (ref_h, ref_c) = _reference_forward(
        inputs, weight_ih, weight_hh, bias_ih, bias_hh, input_lens)
    np.testing.assert_allclose(np.asarray(enc_out), np.asarray(ref_out), rtol=3e-2, atol=3e-2)
    np.testing.assert_allclose(np.asarray(hidden), np.asarray(ref_h), rtol=3e-2, atol=3e-2)
    np.testing.assert_allclose(np.asarray(cell), np.asarray(ref_c), rtol=3e-2, atol=3e-2)

    # also exercise the input_lens=None (plain full-length LSTM) path
    enc2, (h2, c2) = sorted_lstm_forward(inputs, weight_ih, weight_hh, bias_ih, bias_hh)
    jax.block_until_ready((enc2, h2, c2))
    full_lens = jnp.full((B,), T, dtype=jnp.int32)
    ref2, (rh2, rc2) = _reference_forward(
        inputs, weight_ih, weight_hh, bias_ih, bias_hh, full_lens)
    np.testing.assert_allclose(np.asarray(enc2), np.asarray(ref2), rtol=3e-2, atol=3e-2)
    np.testing.assert_allclose(np.asarray(h2), np.asarray(rh2), rtol=3e-2, atol=3e-2)
    np.testing.assert_allclose(np.asarray(c2), np.asarray(rc2), rtol=3e-2, atol=3e-2)

    print("KERNEL_OK")
</pallas_src>

<mosaic_0001>
module attributes {stable_mosaic.version = 11 : i64} {
  func.func @_lstm_kernel(%arg0: i32, %arg1: i32, %arg2: memref<1xi32, #tpu.memory_space<smem>>, %arg3: memref<8x8x512xbf16, #tpu.memory_space<vmem>>, %arg4: memref<128x512xbf16, #tpu.memory_space<vmem>>, %arg5: memref<8x1xi32, #tpu.memory_space<vmem>>, %arg6: memref<8x128xf32, #tpu.memory_space<vmem>>, %arg7: memref<8x128xf32, #tpu.memory_space<vmem>>, %arg8: memref<8x8x128xf32, #tpu.memory_space<vmem>>, %arg9: memref<8x128xf32, #tpu.memory_space<vmem>>, %arg10: memref<8x128xf32, #tpu.memory_space<vmem>>, %arg11: memref<8x128xf32, #tpu.memory_space<vmem>>, %arg12: memref<8x128xf32, #tpu.memory_space<vmem>>) attributes {dimension_semantics = [#tpu.dimension_semantics<parallel>, #tpu.dimension_semantics<arbitrary>], iteration_bounds = array<i64: 1, 1>, scalar_prefetch = 1 : i64, scratch_operands = 2 : i64, tpu.core_type = #tpu.core_type<tc>, window_params = [{transform_indices = @transform_0, window_bounds = array<i64: 8, 8, 512>}, {pipeline_mode = #tpu.pipeline_mode<synchronous>, transform_indices = @transform_1, window_bounds = array<i64: 128, 512>}, {transform_indices = @transform_2, window_bounds = array<i64: 8, 1>}, {transform_indices = @transform_3, window_bounds = array<i64: 8, 128>}, {transform_indices = @transform_4, window_bounds = array<i64: 8, 128>}, {transform_indices = @transform_5, window_bounds = array<i64: 8, 8, 128>}, {transform_indices = @transform_6, window_bounds = array<i64: 8, 128>}, {transform_indices = @transform_7, window_bounds = array<i64: 8, 128>}]} {
    %c0 = arith.constant 0 : index
    %0 = memref.load %arg2[%c0] : memref<1xi32, #tpu.memory_space<smem>>
    %c8_i32 = arith.constant 8 : i32
    %1 = arith.muli %arg1, %c8_i32 : i32
    %c0_i32 = arith.constant 0 : i32
    %2 = arith.cmpi eq, %arg1, %c0_i32 : i32
    %3 = arith.extui %2 : i1 to i32
    %c0_i32_0 = arith.constant 0 : i32
    %4 = arith.cmpi ne, %3, %c0_i32_0 : i32
    scf.if %4 {
      %c0_3 = arith.constant 0 : index
      %c0_4 = arith.constant 0 : index
      %11 = vector.load %arg6[%c0_3, %c0_4] : memref<8x128xf32, #tpu.memory_space<vmem>>, vector<8x128xf32>
      %c0_5 = arith.constant 0 : index
      %c0_6 = arith.constant 0 : index
      %12 = vector.load %arg11[%c0_5, %c0_6] : memref<8x128xf32, #tpu.memory_space<vmem>>, vector<8x128xf32>
      tpu.vector_store %arg11[%c0_5, %c0_6], %11 {strides = array<i32>} : memref<8x128xf32, #tpu.memory_space<vmem>>, vector<8x128xf32>,
      %c0_7 = arith.constant 0 : index
      %c0_8 = arith.constant 0 : index
      %13 = vector.load %arg7[%c0_7, %c0_8] : memref<8x128xf32, #tpu.memory_space<vmem>>, vector<8x128xf32>
      %c0_9 = arith.constant 0 : index
      %c0_10 = arith.constant 0 : index
      %14 = vector.load %arg12[%c0_9, %c0_10] : memref<8x128xf32, #tpu.memory_space<vmem>>, vector<8x128xf32>
      tpu.vector_store %arg12[%c0_9, %c0_10], %13 {strides = array<i32>} : memref<8x128xf32, #tpu.memory_space<vmem>>, vector<8x128xf32>,
      %c0_11 = arith.constant 0 : index
      %c0_12 = arith.constant 0 : index
      %15 = vector.load %arg6[%c0_11, %c0_12] : memref<8x128xf32, #tpu.memory_space<vmem>>, vector<8x128xf32>
      %c0_13 = arith.constant 0 : index
      %c0_14 = arith.constant 0 : index
      %16 = vector.load %arg9[%c0_13, %c0_14] : memref<8x128xf32, #tpu.memory_space<vmem>>, vector<8x128xf32>
      tpu.vector_store %arg9[%c0_13, %c0_14], %15 {strides = array<i32>} : memref<8x128xf32, #tpu.memory_space<vmem>>, vector<8x128xf32>,
      %c0_15 = arith.constant 0 : index
      %c0_16 = arith.constant 0 : index
      %17 = vector.load %arg7[%c0_15, %c0_16] : memref<8x128xf32, #tpu.memory_space<vmem>>, vector<8x128xf32>
      %c0_17 = arith.constant 0 : index
      %c0_18 = arith.constant 0 : index
      %18 = vector.load %arg10[%c0_17, %c0_18] : memref<8x128xf32, #tpu.memory_space<vmem>>, vector<8x128xf32>
      tpu.vector_store %arg10[%c0_17, %c0_18], %17 {strides = array<i32>} : memref<8x128xf32, #tpu.memory_space<vmem>>, vector<8x128xf32>,
    } else {
    }
    %5 = arith.cmpi sge, %1, %0 : i32
    %6 = arith.extui %5 : i1 to i32
    %c0_i32_1 = arith.constant 0 : i32
    %7 = arith.cmpi ne, %6, %c0_i32_1 : i32
    scf.if %7 {
      %cst = arith.constant 1.000000e-07 : f32
      %11 = vector.broadcast %cst : f32 to vector<8x8x128xf32>
      %c0_3 = arith.constant 0 : index
      %c0_4 = arith.constant 0 : index
      %c0_5 = arith.constant 0 : index
      %12 = vector.load %arg8[%c0_3, %c0_4, %c0_5] : memref<8x8x128xf32, #tpu.memory_space<vmem>>, vector<8x8x128xf32>
      tpu.vector_store %arg8[%c0_3, %c0_4, %c0_5], %11 {strides = array<i32>} : memref<8x8x128xf32, #tpu.memory_space<vmem>>, vector<8x8x128xf32>,
    } else {
    }
    %8 = arith.cmpi slt, %1, %0 : i32
    %9 = arith.extui %8 : i1 to i32
    %c0_i32_2 = arith.constant 0 : i32
    %10 = arith.cmpi ne, %9, %c0_i32_2 : i32
    scf.if %10 {
      %c0_3 = arith.constant 0 : index
      %c0_4 = arith.constant 0 : index
      %11 = vector.load %arg4[%c0_3, %c0_4] : memref<128x512xbf16, #tpu.memory_space<vmem>>, vector<128x512xbf16>
      %c0_5 = arith.constant 0 : index
      %c0_6 = arith.constant 0 : index
      %12 = vector.load %arg5[%c0_5, %c0_6] : memref<8x1xi32, #tpu.memory_space<vmem>>, vector<8x1xi32>
      %c0_7 = arith.constant 0 : index
      %c0_8 = arith.constant 0 : index
      %13 = vector.load %arg11[%c0_7, %c0_8] : memref<8x128xf32, #tpu.memory_space<vmem>>, vector<8x128xf32>
      %c0_9 = arith.constant 0 : index
      %c0_10 = arith.constant 0 : index
      %14 = vector.load %arg12[%c0_9, %c0_10] : memref<8x128xf32, #tpu.memory_space<vmem>>, vector<8x128xf32>
      %c0_11 = arith.constant 0 : index
      %c0_12 = arith.constant 0 : index
      %15 = vector.load %arg9[%c0_11, %c0_12] : memref<8x128xf32, #tpu.memory_space<vmem>>, vector<8x128xf32>
      %c0_13 = arith.constant 0 : index
      %c0_14 = arith.constant 0 : index
      %16 = vector.load %arg10[%c0_13, %c0_14] : memref<8x128xf32, #tpu.memory_space<vmem>>, vector<8x128xf32>
      %c0_i32_15 = arith.constant 0 : i32
      %17 = arith.addi %1, %c0_i32_15 : i32
      %c0_16 = arith.constant 0 : index
      %c0_17 = arith.constant 0 : index
      %c0_18 = arith.constant 0 : index
      %18 = vector.load %arg3[%c0_16, %c0_17, %c0_18] : memref<8x8x512xbf16, #tpu.memory_space<vmem>>, vector<1x8x512xbf16>
      %19 = vector.shape_cast %18 : vector<1x8x512xbf16> to vector<8x512xbf16>
      %20 = arith.extf %19 : vector<8x512xbf16> to vector<8x512xf32>
      %21 = arith.truncf %13 : vector<8x128xf32> to vector<8x128xbf16>
      %cst = arith.constant dense<0.000000e+00> : vector<8x512xf32>
      %22 = tpu.matmul %21, %11, %cst {dimension_numbers = #tpu.dot_dimension_numbers<[1], [0], [0], [1], [0, 0, 1, 1], [], []>} : vector<8x128xbf16>, vector<128x512xbf16>, vector<8x512xf32> -> vector<8x512xf32>
      %23 = arith.addf %20, %22 : vector<8x512xf32>
      %24 = vector.extract_strided_slice %23 {offsets = [0, 0], sizes = [8, 128], strides = [1, 1]} : vector<8x512xf32> to vector<8x128xf32>
      %25 = arith.negf %24 : vector<8x128xf32>
      %26 = math.exp %25 : vector<8x128xf32>
      %cst_19 = arith.constant 1.000000e+00 : f32
      %27 = vector.broadcast %cst_19 : f32 to vector<8x128xf32>
      %28 = arith.addf %27, %26 : vector<8x128xf32>
      %29 = arith.divf %27, %28 : vector<8x128xf32>
      %30 = vector.extract_strided_slice %23 {offsets = [0, 128], sizes = [8, 128], strides = [1, 1]} : vector<8x512xf32> to vector<8x128xf32>
      %31 = arith.negf %30 : vector<8x128xf32>
      %32 = math.exp %31 : vector<8x128xf32>
      %cst_20 = arith.constant 1.000000e+00 : f32
      %33 = vector.broadcast %cst_20 : f32 to vector<8x128xf32>
      %34 = arith.addf %33, %32 : vector<8x128xf32>
      %35 = arith.divf %33, %34 : vector<8x128xf32>
      %36 = vector.extract_strided_slice %23 {offsets = [0, 256], sizes = [8, 128], strides = [1, 1]} : vector<8x512xf32> to vector<8x128xf32>
      %37 = math.tanh %36 : vector<8x128xf32>
      %38 = vector.extract_strided_slice %23 {offsets = [0, 384], sizes = [8, 128], strides = [1, 1]} : vector<8x512xf32> to vector<8x128xf32>
      %39 = arith.negf %38 : vector<8x128xf32>
      %40 = math.exp %39 : vector<8x128xf32>
      %cst_21 = arith.constant 1.000000e+00 : f32
      %41 = vector.broadcast %cst_21 : f32 to vector<8x128xf32>
      %42 = arith.addf %41, %40 : vector<8x128xf32>
      %43 = arith.divf %41, %42 : vector<8x128xf32>
      %44 = arith.mulf %35, %14 : vector<8x128xf32>
      %45 = arith.mulf %29, %37 : vector<8x128xf32>
      %46 = arith.addf %44, %45 : vector<8x128xf32>
      %47 = math.tanh %46 : vector<8x128xf32>
      %48 = arith.mulf %43, %47 : vector<8x128xf32>
      %49 = vector.broadcast %17 : i32 to vector<8x1xi32>
      %50 = arith.cmpi slt, %49, %12 : vector<8x1xi32>
      %51 = arith.cmpi slt, %17, %0 : i32
      %cst_22 = arith.constant 0.000000e+00 : f32
      %cst_23 = arith.constant 1.000000e-07 : f32
      %52 = arith.select %51, %cst_22, %cst_23 : f32
      %53 = vector.shape_cast %50 : vector<8x1xi1> to vector<8x1xi1>
      %54 = vector.broadcast %53 : vector<8x1xi1> to vector<8x128xi1>
      %55 = vector.broadcast %52 : f32 to vector<8x128xf32>
      %56 = arith.select %54, %48, %55 : vector<8x128xi1>, vector<8x128xf32>
      %c0_24 = arith.constant 0 : index
      %c0_25 = arith.constant 0 : index
      %c0_26 = arith.constant 0 : index
      %57 = vector.load %arg8[%c0_24, %c0_25, %c0_26] : memref<8x8x128xf32, #tpu.memory_space<vmem>>, vector<1x8x128xf32>
      %58 = vector.shape_cast %57 : vector<1x8x128xf32> to vector<8x128xf32>
      %59 = vector.shape_cast %56 : vector<8x128xf32> to vector<1x8x128xf32>
      tpu.vector_store %arg8[%c0_24, %c0_25, %c0_26], %59 {strides = array<i32>} : memref<8x8x128xf32, #tpu.memory_space<vmem>>, vector<1x8x128xf32>,
      %60 = vector.shape_cast %50 : vector<8x1xi1> to vector<8x1xi1>
      %61 = vector.broadcast %60 : vector<8x1xi1> to vector<8x128xi1>
      %62 = arith.select %61, %48, %15 : vector<8x128xi1>, vector<8x128xf32>
      %63 = vector.shape_cast %50 : vector<8x1xi1> to vector<8x1xi1>
      %64 = vector.broadcast %63 : vector<8x1xi1> to vector<8x128xi1>
      %65 = arith.select %64, %46, %16 : vector<8x128xi1>, vector<8x128xf32>
      %c1_i32 = arith.constant 1 : i32
      %66 = arith.addi %1, %c1_i32 : i32
      %c1 = arith.constant 1 : index
      %c0_27 = arith.constant 0 : index
      %c0_28 = arith.constant 0 : index
      %67 = vector.load %arg3[%c1, %c0_27, %c0_28] : memref<8x8x512xbf16, #tpu.memory_space<vmem>>, vector<1x8x512xbf16>
      %68 = vector.shape_cast %67 : vector<1x8x512xbf16> to vector<8x512xbf16>
      %69 = arith.extf %68 : vector<8x512xbf16> to vector<8x512xf32>
      %70 = arith.truncf %48 : vector<8x128xf32> to vector<8x128xbf16>
      %cst_29 = arith.constant dense<0.000000e+00> : vector<8x512xf32>
      %71 = tpu.matmul %70, %11, %cst_29 {dimension_numbers = #tpu.dot_dimension_numbers<[1], [0], [0], [1], [0, 0, 1, 1], [], []>} : vector<8x128xbf16>, vector<128x512xbf16>, vector<8x512xf32> -> vector<8x512xf32>
      %72 = arith.addf %69, %71 : vector<8x512xf32>
      %73 = vector.extract_strided_slice %72 {offsets = [0, 0], sizes = [8, 128], strides = [1, 1]} : vector<8x512xf32> to vector<8x128xf32>
      %74 = arith.negf %73 : vector<8x128xf32>
      %75 = math.exp %74 : vector<8x128xf32>
      %cst_30 = arith.constant 1.000000e+00 : f32
      %76 = vector.broadcast %cst_30 : f32 to vector<8x128xf32>
      %77 = arith.addf %76, %75 : vector<8x128xf32>
      %78 = arith.divf %76, %77 : vector<8x128xf32>
      %79 = vector.extract_strided_slice %72 {offsets = [0, 128], sizes = [8, 128], strides = [1, 1]} : vector<8x512xf32> to vector<8x128xf32>
      %80 = arith.negf %79 : vector<8x128xf32>
      %81 = math.exp %80 : vector<8x128xf32>
      %cst_31 = arith.constant 1.000000e+00 : f32
      %82 = vector.broadcast %cst_31 : f32 to vector<8x128xf32>
      %83 = arith.addf %82, %81 : vector<8x128xf32>
      %84 = arith.divf %82, %83 : vector<8x128xf32>
      %85 = vector.extract_strided_slice %72 {offsets = [0, 256], sizes = [8, 128], strides = [1, 1]} : vector<8x512xf32> to vector<8x128xf32>
      %86 = math.tanh %85 : vector<8x128xf32>
      %87 = vector.extract_strided_slice %72 {offsets = [0, 384], sizes = [8, 128], strides = [1, 1]} : vector<8x512xf32> to vector<8x128xf32>
      %88 = arith.negf %87 : vector<8x128xf32>
      %89 = math.exp %88 : vector<8x128xf32>
      %cst_32 = arith.constant 1.000000e+00 : f32
      %90 = vector.broadcast %cst_32 : f32 to vector<8x128xf32>
      %91 = arith.addf %90, %89 : vector<8x128xf32>
      %92 = arith.divf %90, %91 : vector<8x128xf32>
      %93 = arith.mulf %84, %46 : vector<8x128xf32>
      %94 = arith.mulf %78, %86 : vector<8x128xf32>
      %95 = arith.addf %93, %94 : vector<8x128xf32>
      %96 = math.tanh %95 : vector<8x128xf32>
      %97 = arith.mulf %92, %96 : vector<8x128xf32>
      %98 = vector.broadcast %66 : i32 to vector<8x1xi32>
      %99 = arith.cmpi slt, %98, %12 : vector<8x1xi32>
      %100 = arith.cmpi slt, %66, %0 : i32
      %cst_33 = arith.constant 0.000000e+00 : f32
      %cst_34 = arith.constant 1.000000e-07 : f32
      %101 = arith.select %100, %cst_33, %cst_34 : f32
      %102 = vector.shape_cast %99 : vector<8x1xi1> to vector<8x1xi1>
      %103 = vector.broadcast %102 : vector<8x1xi1> to vector<8x128xi1>
      %104 = vector.broadcast %101 : f32 to vector<8x128xf32>
      %105 = arith.select %103, %97, %104 : vector<8x128xi1>, vector<8x128xf32>
      %c1_35 = arith.constant 1 : index
      %c0_36 = arith.constant 0 : index
      %c0_37 = arith.constant 0 : index
      %106 = vector.load %arg8[%c1_35, %c0_36, %c0_37] : memref<8x8x128xf32, #tpu.memory_space<vmem>>, vector<1x8x128xf32>
      %107 = vector.shape_cast %106 : vector<1x8x128xf32> to vector<8x128xf32>
      %108 = vector.shape_cast %105 : vector<8x128xf32> to vector<1x8x128xf32>
      tpu.vector_store %arg8[%c1_35, %c0_36, %c0_37], %108 {strides = array<i32>} : memref<8x8x128xf32, #tpu.memory_space<vmem>>, vector<1x8x128xf32>,
      %109 = vector.shape_cast %99 : vector<8x1xi1> to vector<8x1xi1>
      %110 = vector.broadcast %109 : vector<8x1xi1> to vector<8x128xi1>
      %111 = arith.select %110, %97, %62 : vector<8x128xi1>, vector<8x128xf32>
      %112 = vector.shape_cast %99 : vector<8x1xi1> to vector<8x1xi1>
      %113 = vector.broadcast %112 : vector<8x1xi1> to vector<8x128xi1>
      %114 = arith.select %113, %95, %65 : vector<8x128xi1>, vector<8x128xf32>
      %c2_i32 = arith.constant 2 : i32
      %115 = arith.addi %1, %c2_i32 : i32
      %c2 = arith.constant 2 : index
      %c0_38 = arith.constant 0 : index
      %c0_39 = arith.constant 0 : index
      %116 = vector.load %arg3[%c2, %c0_38, %c0_39] : memref<8x8x512xbf16, #tpu.memory_space<vmem>>, vector<1x8x512xbf16>
      %117 = vector.shape_cast %116 : vector<1x8x512xbf16> to vector<8x512xbf16>
      %118 = arith.extf %117 : vector<8x512xbf16> to vector<8x512xf32>
      %119 = arith.truncf %97 : vector<8x128xf32> to vector<8x128xbf16>
      %cst_40 = arith.constant dense<0.000000e+00> : vector<8x512xf32>
      %120 = tpu.matmul %119, %11, %cst_40 {dimension_numbers = #tpu.dot_dimension_numbers<[1], [0], [0], [1], [0, 0, 1, 1], [], []>} : vector<8x128xbf16>, vector<128x512xbf16>, vector<8x512xf32> -> vector<8x512xf32>
      %121 = arith.addf %118, %120 : vector<8x512xf32>
      %122 = vector.extract_strided_slice %121 {offsets = [0, 0], sizes = [8, 128], strides = [1, 1]} : vector<8x512xf32> to vector<8x128xf32>
      %123 = arith.negf %122 : vector<8x128xf32>
      %124 = math.exp %123 : vector<8x128xf32>
      %cst_41 = arith.constant 1.000000e+00 : f32
      %125 = vector.broadcast %cst_41 : f32 to vector<8x128xf32>
      %126 = arith.addf %125, %124 : vector<8x128xf32>
      %127 = arith.divf %125, %126 : vector<8x128xf32>
      %128 = vector.extract_strided_slice %121 {offsets = [0, 128], sizes = [8, 128], strides = [1, 1]} : vector<8x512xf32> to vector<8x128xf32>
      %129 = arith.negf %128 : vector<8x128xf32>
      %130 = math.exp %129 : vector<8x128xf32>
      %cst_42 = arith.constant 1.000000e+00 : f32
      %131 = vector.broadcast %cst_42 : f32 to vector<8x128xf32>
      %132 = arith.addf %131, %130 : vector<8x128xf32>
      %133 = arith.divf %131, %132 : vector<8x128xf32>
      %134 = vector.extract_strided_slice %121 {offsets = [0, 256], sizes = [8, 128], strides = [1, 1]} : vector<8x512xf32> to vector<8x128xf32>
      %135 = math.tanh %134 : vector<8x128xf32>
      %136 = vector.extract_strided_slice %121 {offsets = [0, 384], sizes = [8, 128], strides = [1, 1]} : vector<8x512xf32> to vector<8x128xf32>
      %137 = arith.negf %136 : vector<8x128xf32>
      %138 = math.exp %137 : vector<8x128xf32>
      %cst_43 = arith.constant 1.000000e+00 : f32
      %139 = vector.broadcast %cst_43 : f32 to vector<8x128xf32>
      %140 = arith.addf %139, %138 : vector<8x128xf32>
      %141 = arith.divf %139, %140 : vector<8x128xf32>
      %142 = arith.mulf %133, %95 : vector<8x128xf32>
      %143 = arith.mulf %127, %135 : vector<8x128xf32>
      %144 = arith.addf %142, %143 : vector<8x128xf32>
      %145 = math.tanh %144 : vector<8x128xf32>
      %146 = arith.mulf %141, %145 : vector<8x128xf32>
      %147 = vector.broadcast %115 : i32 to vector<8x1xi32>
      %148 = arith.cmpi slt, %147, %12 : vector<8x1xi32>
      %149 = arith.cmpi slt, %115, %0 : i32
      %cst_44 = arith.constant 0.000000e+00 : f32
      %cst_45 = arith.constant 1.000000e-07 : f32
      %150 = arith.select %149, %cst_44, %cst_45 : f32
      %151 = vector.shape_cast %148 : vector<8x1xi1> to vector<8x1xi1>
      %152 = vector.broadcast %151 : vector<8x1xi1> to vector<8x128xi1>
      %153 = vector.broadcast %150 : f32 to vector<8x128xf32>
      %154 = arith.select %152, %146, %153 : vector<8x128xi1>, vector<8x128xf32>
      %c2_46 = arith.constant 2 : index
      %c0_47 = arith.constant 0 : index
      %c0_48 = arith.constant 0 : index
      %155 = vector.load %arg8[%c2_46, %c0_47, %c0_48] : memref<8x8x128xf32, #tpu.memory_space<vmem>>, vector<1x8x128xf32>
      %156 = vector.shape_cast %155 : vector<1x8x128xf32> to vector<8x128xf32>
      %157 = vector.shape_cast %154 : vector<8x128xf32> to vector<1x8x128xf32>
      tpu.vector_store %arg8[%c2_46, %c0_47, %c0_48], %157 {strides = array<i32>} : memref<8x8x128xf32, #tpu.memory_space<vmem>>, vector<1x8x128xf32>,
      %158 = vector.shape_cast %148 : vector<8x1xi1> to vector<8x1xi1>
      %159 = vector.broadcast %158 : vector<8x1xi1> to vector<8x128xi1>
      %160 = arith.select %159, %146, %111 : vector<8x128xi1>, vector<8x128xf32>
      %161 = vector.shape_cast %148 : vector<8x1xi1> to vector<8x1xi1>
      %162 = vector.broadcast %161 : vector<8x1xi1> to vector<8x128xi1>
      %163 = arith.select %162, %144, %114 : vector<8x128xi1>, vector<8x128xf32>
      %c3_i32 = arith.constant 3 : i32
      %164 = arith.addi %1, %c3_i32 : i32
      %c3 = arith.constant 3 : index
      %c0_49 = arith.constant 0 : index
      %c0_50 = arith.constant 0 : index
      %165 = vector.load %arg3[%c3, %c0_49, %c0_50] : memref<8x8x512xbf16, #tpu.memory_space<vmem>>, vector<1x8x512xbf16>
      %166 = vector.shape_cast %165 : vector<1x8x512xbf16> to vector<8x512xbf16>
      %167 = arith.extf %166 : vector<8x512xbf16> to vector<8x512xf32>
      %168 = arith.truncf %146 : vector<8x128xf32> to vector<8x128xbf16>
      %cst_51 = arith.constant dense<0.000000e+00> : vector<8x512xf32>
      %169 = tpu.matmul %168, %11, %cst_51 {dimension_numbers = #tpu.dot_dimension_numbers<[1], [0], [0], [1], [0, 0, 1, 1], [], []>} : vector<8x128xbf16>, vector<128x512xbf16>, vector<8x512xf32> -> vector<8x512xf32>
      %170 = arith.addf %167, %169 : vector<8x512xf32>
      %171 = vector.extract_strided_slice %170 {offsets = [0, 0], sizes = [8, 128], strides = [1, 1]} : vector<8x512xf32> to vector<8x128xf32>
      %172 = arith.negf %171 : vector<8x128xf32>
      %173 = math.exp %172 : vector<8x128xf32>
      %cst_52 = arith.constant 1.000000e+00 : f32
      %174 = vector.broadcast %cst_52 : f32 to vector<8x128xf32>
      %175 = arith.addf %174, %173 : vector<8x128xf32>
      %176 = arith.divf %174, %175 : vector<8x128xf32>
      %177 = vector.extract_strided_slice %170 {offsets = [0, 128], sizes = [8, 128], strides = [1, 1]} : vector<8x512xf32> to vector<8x128xf32>
      %178 = arith.negf %177 : vector<8x128xf32>
      %179 = math.exp %178 : vector<8x128xf32>
      %cst_53 = arith.constant 1.000000e+00 : f32
      %180 = vector.broadcast %cst_53 : f32 to vector<8x128xf32>
      %181 = arith.addf %180, %179 : vector<8x128xf32>
      %182 = arith.divf %180, %181 : vector<8x128xf32>
      %183 = vector.extract_strided_slice %170 {offsets = [0, 256], sizes = [8, 128], strides = [1, 1]} : vector<8x512xf32> to vector<8x128xf32>
      %184 = math.tanh %183 : vector<8x128xf32>
      %185 = vector.extract_strided_slice %170 {offsets = [0, 384], sizes = [8, 128], strides = [1, 1]} : vector<8x512xf32> to vector<8x128xf32>
      %186 = arith.negf %185 : vector<8x128xf32>
      %187 = math.exp %186 : vector<8x128xf32>
      %cst_54 = arith.constant 1.000000e+00 : f32
      %188 = vector.broadcast %cst_54 : f32 to vector<8x128xf32>
      %189 = arith.addf %188, %187 : vector<8x128xf32>
      %190 = arith.divf %188, %189 : vector<8x128xf32>
      %191 = arith.mulf %182, %144 : vector<8x128xf32>
      %192 = arith.mulf %176, %184 : vector<8x128xf32>
      %193 = arith.addf %191, %192 : vector<8x128xf32>
      %194 = math.tanh %193 : vector<8x128xf32>
      %195 = arith.mulf %190, %194 : vector<8x128xf32>
      %196 = vector.broadcast %164 : i32 to vector<8x1xi32>
      %197 = arith.cmpi slt, %196, %12 : vector<8x1xi32>
      %198 = arith.cmpi slt, %164, %0 : i32
      %cst_55 = arith.constant 0.000000e+00 : f32
      %cst_56 = arith.constant 1.000000e-07 : f32
      %199 = arith.select %198, %cst_55, %cst_56 : f32
      %200 = vector.shape_cast %197 : vector<8x1xi1> to vector<8x1xi1>
      %201 = vector.broadcast %200 : vector<8x1xi1> to vector<8x128xi1>
      %202 = vector.broadcast %199 : f32 to vector<8x128xf32>
      %203 = arith.select %201, %195, %202 : vector<8x128xi1>, vector<8x128xf32>
      %c3_57 = arith.constant 3 : index
      %c0_58 = arith.constant 0 : index
      %c0_59 = arith.constant 0 : index
      %204 = vector.load %arg8[%c3_57, %c0_58, %c0_59] : memref<8x8x128xf32, #tpu.memory_space<vmem>>, vector<1x8x128xf32>
      %205 = vector.shape_cast %204 : vector<1x8x128xf32> to vector<8x128xf32>
      %206 = vector.shape_cast %203 : vector<8x128xf32> to vector<1x8x128xf32>
      tpu.vector_store %arg8[%c3_57, %c0_58, %c0_59], %206 {strides = array<i32>} : memref<8x8x128xf32, #tpu.memory_space<vmem>>, vector<1x8x128xf32>,
      %207 = vector.shape_cast %197 : vector<8x1xi1> to vector<8x1xi1>
      %208 = vector.broadcast %207 : vector<8x1xi1> to vector<8x128xi1>
      %209 = arith.select %208, %195, %160 : vector<8x128xi1>, vector<8x128xf32>
      %210 = vector.shape_cast %197 : vector<8x1xi1> to vector<8x1xi1>
      %211 = vector.broadcast %210 : vector<8x1xi1> to vector<8x128xi1>
      %212 = arith.select %211, %193, %163 : vector<8x128xi1>, vector<8x128xf32>
      %c4_i32 = arith.constant 4 : i32
      %213 = arith.addi %1, %c4_i32 : i32
      %c4 = arith.constant 4 : index
      %c0_60 = arith.constant 0 : index
      %c0_61 = arith.constant 0 : index
      %214 = vector.load %arg3[%c4, %c0_60, %c0_61] : memref<8x8x512xbf16, #tpu.memory_space<vmem>>, vector<1x8x512xbf16>
      %215 = vector.shape_cast %214 : vector<1x8x512xbf16> to vector<8x512xbf16>
      %216 = arith.extf %215 : vector<8x512xbf16> to vector<8x512xf32>
      %217 = arith.truncf %195 : vector<8x128xf32> to vector<8x128xbf16>
      %cst_62 = arith.constant dense<0.000000e+00> : vector<8x512xf32>
      %218 = tpu.matmul %217, %11, %cst_62 {dimension_numbers = #tpu.dot_dimension_numbers<[1], [0], [0], [1], [0, 0, 1, 1], [], []>} : vector<8x128xbf16>, vector<128x512xbf16>, vector<8x512xf32> -> vector<8x512xf32>
      %219 = arith.addf %216, %218 : vector<8x512xf32>
      %220 = vector.extract_strided_slice %219 {offsets = [0, 0], sizes = [8, 128], strides = [1, 1]} : vector<8x512xf32> to vector<8x128xf32>
      %221 = arith.negf %220 : vector<8x128xf32>
      %222 = math.exp %221 : vector<8x128xf32>
      %cst_63 = arith.constant 1.000000e+00 : f32
      %223 = vector.broadcast %cst_63 : f32 to vector<8x128xf32>
      %224 = arith.addf %223, %222 : vector<8x128xf32>
      %225 = arith.divf %223, %224 : vector<8x128xf32>
      %226 = vector.extract_strided_slice %219 {offsets = [0, 128], sizes = [8, 128], strides = [1, 1]} : vector<8x512xf32> to vector<8x128xf32>
      %227 = arith.negf %226 : vector<8x128xf32>
      %228 = math.exp %227 : vector<8x128xf32>
      %cst_64 = arith.constant 1.000000e+00 : f32
      %229 = vector.broadcast %cst_64 : f32 to vector<8x128xf32>
      %230 = arith.addf %229, %228 : vector<8x128xf32>
      %231 = arith.divf %229, %230 : vector<8x128xf32>
      %232 = vector.extract_strided_slice %219 {offsets = [0, 256], sizes = [8, 128], strides = [1, 1]} : vector<8x512xf32> to vector<8x128xf32>
      %233 = math.tanh %232 : vector<8x128xf32>
      %234 = vector.extract_strided_slice %219 {offsets = [0, 384], sizes = [8, 128], strides = [1, 1]} : vector<8x512xf32> to vector<8x128xf32>
      %235 = arith.negf %234 : vector<8x128xf32>
      %236 = math.exp %235 : vector<8x128xf32>
      %cst_65 = arith.constant 1.000000e+00 : f32
      %237 = vector.broadcast %cst_65 : f32 to vector<8x128xf32>
      %238 = arith.addf %237, %236 : vector<8x128xf32>
      %239 = arith.divf %237, %238 : vector<8x128xf32>
      %240 = arith.mulf %231, %193 : vector<8x128xf32>
      %241 = arith.mulf %225, %233 : vector<8x128xf32>
      %242 = arith.addf %240, %241 : vector<8x128xf32>
      %243 = math.tanh %242 : vector<8x128xf32>
      %244 = arith.mulf %239, %243 : vector<8x128xf32>
      %245 = vector.broadcast %213 : i32 to vector<8x1xi32>
      %246 = arith.cmpi slt, %245, %12 : vector<8x1xi32>
      %247 = arith.cmpi slt, %213, %0 : i32
      %cst_66 = arith.constant 0.000000e+00 : f32
      %cst_67 = arith.constant 1.000000e-07 : f32
      %248 = arith.select %247, %cst_66, %cst_67 : f32
      %249 = vector.shape_cast %246 : vector<8x1xi1> to vector<8x1xi1>
      %250 = vector.broadcast %249 : vector<8x1xi1> to vector<8x128xi1>
      %251 = vector.broadcast %248 : f32 to vector<8x128xf32>
      %252 = arith.select %250, %244, %251 : vector<8x128xi1>, vector<8x128xf32>
      %c4_68 = arith.constant 4 : index
      %c0_69 = arith.constant 0 : index
      %c0_70 = arith.constant 0 : index
      %253 = vector.load %arg8[%c4_68, %c0_69, %c0_70] : memref<8x8x128xf32, #tpu.memory_space<vmem>>, vector<1x8x128xf32>
      %254 = vector.shape_cast %253 : vector<1x8x128xf32> to vector<8x128xf32>
      %255 = vector.shape_cast %252 : vector<8x128xf32> to vector<1x8x128xf32>
      tpu.vector_store %arg8[%c4_68, %c0_69, %c0_70], %255 {strides = array<i32>} : memref<8x8x128xf32, #tpu.memory_space<vmem>>, vector<1x8x128xf32>,
      %256 = vector.shape_cast %246 : vector<8x1xi1> to vector<8x1xi1>
      %257 = vector.broadcast %256 : vector<8x1xi1> to vector<8x128xi1>
      %258 = arith.select %257, %244, %209 : vector<8x128xi1>, vector<8x128xf32>
      %259 = vector.shape_cast %246 : vector<8x1xi1> to vector<8x1xi1>
      %260 = vector.broadcast %259 : vector<8x1xi1> to vector<8x128xi1>
      %261 = arith.select %260, %242, %212 : vector<8x128xi1>, vector<8x128xf32>
      %c5_i32 = arith.constant 5 : i32
      %262 = arith.addi %1, %c5_i32 : i32
      %c5 = arith.constant 5 : index
      %c0_71 = arith.constant 0 : index
      %c0_72 = arith.constant 0 : index
      %263 = vector.load %arg3[%c5, %c0_71, %c0_72] : memref<8x8x512xbf16, #tpu.memory_space<vmem>>, vector<1x8x512xbf16>
      %264 = vector.shape_cast %263 : vector<1x8x512xbf16> to vector<8x512xbf16>
      %265 = arith.extf %264 : vector<8x512xbf16> to vector<8x512xf32>
      %266 = arith.truncf %244 : vector<8x128xf32> to vector<8x128xbf16>
      %cst_73 = arith.constant dense<0.000000e+00> : vector<8x512xf32>
      %267 = tpu.matmul %266, %11, %cst_73 {dimension_numbers = #tpu.dot_dimension_numbers<[1], [0], [0], [1], [0, 0, 1, 1], [], []>} : vector<8x128xbf16>, vector<128x512xbf16>, vector<8x512xf32> -> vector<8x512xf32>
      %268 = arith.addf %265, %267 : vector<8x512xf32>
      %269 = vector.extract_strided_slice %268 {offsets = [0, 0], sizes = [8, 128], strides = [1, 1]} : vector<8x512xf32> to vector<8x128xf32>
      %270 = arith.negf %269 : vector<8x128xf32>
      %271 = math.exp %270 : vector<8x128xf32>
      %cst_74 = arith.constant 1.000000e+00 : f32
      %272 = vector.broadcast %cst_74 : f32 to vector<8x128xf32>
      %273 = arith.addf %272, %271 : vector<8x128xf32>
      %274 = arith.divf %272, %273 : vector<8x128xf32>
      %275 = vector.extract_strided_slice %268 {offsets = [0, 128], sizes = [8, 128], strides = [1, 1]} : vector<8x512xf32> to vector<8x128xf32>
      %276 = arith.negf %275 : vector<8x128xf32>
      %277 = math.exp %276 : vector<8x128xf32>
      %cst_75 = arith.constant 1.000000e+00 : f32
      %278 = vector.broadcast %cst_75 : f32 to vector<8x128xf32>
      %279 = arith.addf %278, %277 : vector<8x128xf32>
      %280 = arith.divf %278, %279 : vector<8x128xf32>
      %281 = vector.extract_strided_slice %268 {offsets = [0, 256], sizes = [8, 128], strides = [1, 1]} : vector<8x512xf32> to vector<8x128xf32>
      %282 = math.tanh %281 : vector<8x128xf32>
      %283 = vector.extract_strided_slice %268 {offsets = [0, 384], sizes = [8, 128], strides = [1, 1]} : vector<8x512xf32> to vector<8x128xf32>
      %284 = arith.negf %283 : vector<8x128xf32>
      %285 = math.exp %284 : vector<8x128xf32>
      %cst_76 = arith.constant 1.000000e+00 : f32
      %286 = vector.broadcast %cst_76 : f32 to vector<8x128xf32>
      %287 = arith.addf %286, %285 : vector<8x128xf32>
      %288 = arith.divf %286, %287 : vector<8x128xf32>
      %289 = arith.mulf %280, %242 : vector<8x128xf32>
      %290 = arith.mulf %274, %282 : vector<8x128xf32>
      %291 = arith.addf %289, %290 : vector<8x128xf32>
      %292 = math.tanh %291 : vector<8x128xf32>
      %293 = arith.mulf %288, %292 : vector<8x128xf32>
      %294 = vector.broadcast %262 : i32 to vector<8x1xi32>
      %295 = arith.cmpi slt, %294, %12 : vector<8x1xi32>
      %296 = arith.cmpi slt, %262, %0 : i32
      %cst_77 = arith.constant 0.000000e+00 : f32
      %cst_78 = arith.constant 1.000000e-07 : f32
      %297 = arith.select %296, %cst_77, %cst_78 : f32
      %298 = vector.shape_cast %295 : vector<8x1xi1> to vector<8x1xi1>
      %299 = vector.broadcast %298 : vector<8x1xi1> to vector<8x128xi1>
      %300 = vector.broadcast %297 : f32 to vector<8x128xf32>
      %301 = arith.select %299, %293, %300 : vector<8x128xi1>, vector<8x128xf32>
      %c5_79 = arith.constant 5 : index
      %c0_80 = arith.constant 0 : index
      %c0_81 = arith.constant 0 : index
      %302 = vector.load %arg8[%c5_79, %c0_80, %c0_81] : memref<8x8x128xf32, #tpu.memory_space<vmem>>, vector<1x8x128xf32>
      %303 = vector.shape_cast %302 : vector<1x8x128xf32> to vector<8x128xf32>
      %304 = vector.shape_cast %301 : vector<8x128xf32> to vector<1x8x128xf32>
      tpu.vector_store %arg8[%c5_79, %c0_80, %c0_81], %304 {strides = array<i32>} : memref<8x8x128xf32, #tpu.memory_space<vmem>>, vector<1x8x128xf32>,
      %305 = vector.shape_cast %295 : vector<8x1xi1> to vector<8x1xi1>
      %306 = vector.broadcast %305 : vector<8x1xi1> to vector<8x128xi1>
      %307 = arith.select %306, %293, %258 : vector<8x128xi1>, vector<8x128xf32>
      %308 = vector.shape_cast %295 : vector<8x1xi1> to vector<8x1xi1>
      %309 = vector.broadcast %308 : vector<8x1xi1> to vector<8x128xi1>
      %310 = arith.select %309, %291, %261 : vector<8x128xi1>, vector<8x128xf32>
      %c6_i32 = arith.constant 6 : i32
      %311 = arith.addi %1, %c6_i32 : i32
      %c6 = arith.constant 6 : index
      %c0_82 = arith.constant 0 : index
      %c0_83 = arith.constant 0 : index
      %312 = vector.load %arg3[%c6, %c0_82, %c0_83] : memref<8x8x512xbf16, #tpu.memory_space<vmem>>, vector<1x8x512xbf16>
      %313 = vector.shape_cast %312 : vector<1x8x512xbf16> to vector<8x512xbf16>
      %314 = arith.extf %313 : vector<8x512xbf16> to vector<8x512xf32>
      %315 = arith.truncf %293 : vector<8x128xf32> to vector<8x128xbf16>
      %cst_84 = arith.constant dense<0.000000e+00> : vector<8x512xf32>
      %316 = tpu.matmul %315, %11, %cst_84 {dimension_numbers = #tpu.dot_dimension_numbers<[1], [0], [0], [1], [0, 0, 1, 1], [], []>} : vector<8x128xbf16>, vector<128x512xbf16>, vector<8x512xf32> -> vector<8x512xf32>
      %317 = arith.addf %314, %316 : vector<8x512xf32>
      %318 = vector.extract_strided_slice %317 {offsets = [0, 0], sizes = [8, 128], strides = [1, 1]} : vector<8x512xf32> to vector<8x128xf32>
      %319 = arith.negf %318 : vector<8x128xf32>
      %320 = math.exp %319 : vector<8x128xf32>
      %cst_85 = arith.constant 1.000000e+00 : f32
      %321 = vector.broadcast %cst_85 : f32 to vector<8x128xf32>
      %322 = arith.addf %321, %320 : vector<8x128xf32>
      %323 = arith.divf %321, %322 : vector<8x128xf32>
      %324 = vector.extract_strided_slice %317 {offsets = [0, 128], sizes = [8, 128], strides = [1, 1]} : vector<8x512xf32> to vector<8x128xf32>
      %325 = arith.negf %324 : vector<8x128xf32>
      %326 = math.exp %325 : vector<8x128xf32>
      %cst_86 = arith.constant 1.000000e+00 : f32
      %327 = vector.broadcast %cst_86 : f32 to vector<8x128xf32>
      %328 = arith.addf %327, %326 : vector<8x128xf32>
      %329 = arith.divf %327, %328 : vector<8x128xf32>
      %330 = vector.extract_strided_slice %317 {offsets = [0, 256], sizes = [8, 128], strides = [1, 1]} : vector<8x512xf32> to vector<8x128xf32>
      %331 = math.tanh %330 : vector<8x128xf32>
      %332 = vector.extract_strided_slice %317 {offsets = [0, 384], sizes = [8, 128], strides = [1, 1]} : vector<8x512xf32> to vector<8x128xf32>
      %333 = arith.negf %332 : vector<8x128xf32>
      %334 = math.exp %333 : vector<8x128xf32>
      %cst_87 = arith.constant 1.000000e+00 : f32
      %335 = vector.broadcast %cst_87 : f32 to vector<8x128xf32>
      %336 = arith.addf %335, %334 : vector<8x128xf32>
      %337 = arith.divf %335, %336 : vector<8x128xf32>
      %338 = arith.mulf %329, %291 : vector<8x128xf32>
      %339 = arith.mulf %323, %331 : vector<8x128xf32>
      %340 = arith.addf %338, %339 : vector<8x128xf32>
      %341 = math.tanh %340 : vector<8x128xf32>
      %342 = arith.mulf %337, %341 : vector<8x128xf32>
      %343 = vector.broadcast %311 : i32 to vector<8x1xi32>
      %344 = arith.cmpi slt, %343, %12 : vector<8x1xi32>
      %345 = arith.cmpi slt, %311, %0 : i32
      %cst_88 = arith.constant 0.000000e+00 : f32
      %cst_89 = arith.constant 1.000000e-07 : f32
      %346 = arith.select %345, %cst_88, %cst_89 : f32
      %347 = vector.shape_cast %344 : vector<8x1xi1> to vector<8x1xi1>
      %348 = vector.broadcast %347 : vector<8x1xi1> to vector<8x128xi1>
      %349 = vector.broadcast %346 : f32 to vector<8x128xf32>
      %350 = arith.select %348, %342, %349 : vector<8x128xi1>, vector<8x128xf32>
      %c6_90 = arith.constant 6 : index
      %c0_91 = arith.constant 0 : index
      %c0_92 = arith.constant 0 : index
      %351 = vector.load %arg8[%c6_90, %c0_91, %c0_92] : memref<8x8x128xf32, #tpu.memory_space<vmem>>, vector<1x8x128xf32>
      %352 = vector.shape_cast %351 : vector<1x8x128xf32> to vector<8x128xf32>
      %353 = vector.shape_cast %350 : vector<8x128xf32> to vector<1x8x128xf32>
      tpu.vector_store %arg8[%c6_90, %c0_91, %c0_92], %353 {strides = array<i32>} : memref<8x8x128xf32, #tpu.memory_space<vmem>>, vector<1x8x128xf32>,
      %354 = vector.shape_cast %344 : vector<8x1xi1> to vector<8x1xi1>
      %355 = vector.broadcast %354 : vector<8x1xi1> to vector<8x128xi1>
      %356 = arith.select %355, %342, %307 : vector<8x128xi1>, vector<8x128xf32>
      %357 = vector.shape_cast %344 : vector<8x1xi1> to vector<8x1xi1>
      %358 = vector.broadcast %357 : vector<8x1xi1> to vector<8x128xi1>
      %359 = arith.select %358, %340, %310 : vector<8x128xi1>, vector<8x128xf32>
      %c7_i32 = arith.constant 7 : i32
      %360 = arith.addi %1, %c7_i32 : i32
      %c7 = arith.constant 7 : index
      %c0_93 = arith.constant 0 : index
      %c0_94 = arith.constant 0 : index
      %361 = vector.load %arg3[%c7, %c0_93, %c0_94] : memref<8x8x512xbf16, #tpu.memory_space<vmem>>, vector<1x8x512xbf16>
      %362 = vector.shape_cast %361 : vector<1x8x512xbf16> to vector<8x512xbf16>
      %363 = arith.extf %362 : vector<8x512xbf16> to vector<8x512xf32>
      %364 = arith.truncf %342 : vector<8x128xf32> to vector<8x128xbf16>
      %cst_95 = arith.constant dense<0.000000e+00> : vector<8x512xf32>
      %365 = tpu.matmul %364, %11, %cst_95 {dimension_numbers = #tpu.dot_dimension_numbers<[1], [0], [0], [1], [0, 0, 1, 1], [], []>} : vector<8x128xbf16>, vector<128x512xbf16>, vector<8x512xf32> -> vector<8x512xf32>
      %366 = arith.addf %363, %365 : vector<8x512xf32>
      %367 = vector.extract_strided_slice %366 {offsets = [0, 0], sizes = [8, 128], strides = [1, 1]} : vector<8x512xf32> to vector<8x128xf32>
      %368 = arith.negf %367 : vector<8x128xf32>
      %369 = math.exp %368 : vector<8x128xf32>
      %cst_96 = arith.constant 1.000000e+00 : f32
      %370 = vector.broadcast %cst_96 : f32 to vector<8x128xf32>
      %371 = arith.addf %370, %369 : vector<8x128xf32>
      %372 = arith.divf %370, %371 : vector<8x128xf32>
      %373 = vector.extract_strided_slice %366 {offsets = [0, 128], sizes = [8, 128], strides = [1, 1]} : vector<8x512xf32> to vector<8x128xf32>
      %374 = arith.negf %373 : vector<8x128xf32>
      %375 = math.exp %374 : vector<8x128xf32>
      %cst_97 = arith.constant 1.000000e+00 : f32
      %376 = vector.broadcast %cst_97 : f32 to vector<8x128xf32>
      %377 = arith.addf %376, %375 : vector<8x128xf32>
      %378 = arith.divf %376, %377 : vector<8x128xf32>
      %379 = vector.extract_strided_slice %366 {offsets = [0, 256], sizes = [8, 128], strides = [1, 1]} : vector<8x512xf32> to vector<8x128xf32>
      %380 = math.tanh %379 : vector<8x128xf32>
      %381 = vector.extract_strided_slice %366 {offsets = [0, 384], sizes = [8, 128], strides = [1, 1]} : vector<8x512xf32> to vector<8x128xf32>
      %382 = arith.negf %381 : vector<8x128xf32>
      %383 = math.exp %382 : vector<8x128xf32>
      %cst_98 = arith.constant 1.000000e+00 : f32
      %384 = vector.broadcast %cst_98 : f32 to vector<8x128xf32>
      %385 = arith.addf %384, %383 : vector<8x128xf32>
      %386 = arith.divf %384, %385 : vector<8x128xf32>
      %387 = arith.mulf %378, %340 : vector<8x128xf32>
      %388 = arith.mulf %372, %380 : vector<8x128xf32>
      %389 = arith.addf %387, %388 : vector<8x128xf32>
      %390 = math.tanh %389 : vector<8x128xf32>
      %391 = arith.mulf %386, %390 : vector<8x128xf32>
      %392 = vector.broadcast %360 : i32 to vector<8x1xi32>
      %393 = arith.cmpi slt, %392, %12 : vector<8x1xi32>
      %394 = arith.cmpi slt, %360, %0 : i32
      %cst_99 = arith.constant 0.000000e+00 : f32
      %cst_100 = arith.constant 1.000000e-07 : f32
      %395 = arith.select %394, %cst_99, %cst_100 : f32
      %396 = vector.shape_cast %393 : vector<8x1xi1> to vector<8x1xi1>
      %397 = vector.broadcast %396 : vector<8x1xi1> to vector<8x128xi1>
      %398 = vector.broadcast %395 : f32 to vector<8x128xf32>
      %399 = arith.select %397, %391, %398 : vector<8x128xi1>, vector<8x128xf32>
      %c7_101 = arith.constant 7 : index
      %c0_102 = arith.constant 0 : index
      %c0_103 = arith.constant 0 : index
      %400 = vector.load %arg8[%c7_101, %c0_102, %c0_103] : memref<8x8x128xf32, #tpu.memory_space<vmem>>, vector<1x8x128xf32>
      %401 = vector.shape_cast %400 : vector<1x8x128xf32> to vector<8x128xf32>
      %402 = vector.shape_cast %399 : vector<8x128xf32> to vector<1x8x128xf32>
      tpu.vector_store %arg8[%c7_101, %c0_102, %c0_103], %402 {strides = array<i32>} : memref<8x8x128xf32, #tpu.memory_space<vmem>>, vector<1x8x128xf32>,
      %403 = vector.shape_cast %393 : vector<8x1xi1> to vector<8x1xi1>
      %404 = vector.broadcast %403 : vector<8x1xi1> to vector<8x128xi1>
      %405 = arith.select %404, %391, %356 : vector<8x128xi1>, vector<8x128xf32>
      %406 = vector.shape_cast %393 : vector<8x1xi1> to vector<8x1xi1>
      %407 = vector.broadcast %406 : vector<8x1xi1> to vector<8x128xi1>
      %408 = arith.select %407, %389, %359 : vector<8x128xi1>, vector<8x128xf32>
      %c0_104 = arith.constant 0 : index
      %c0_105 = arith.constant 0 : index
      %409 = vector.load %arg11[%c0_104, %c0_105] : memref<8x128xf32, #tpu.memory_space<vmem>>, vector<8x128xf32>
      tpu.vector_store %arg11[%c0_104, %c0_105], %391 {strides = array<i32>} : memref<8x128xf32, #tpu.memory_space<vmem>>, vector<8x128xf32>,
      %c0_106 = arith.constant 0 : index
      %c0_107 = arith.constant 0 : index
      %410 = vector.load %arg12[%c0_106, %c0_107] : memref<8x128xf32, #tpu.memory_space<vmem>>, vector<8x128xf32>
      tpu.vector_store %arg12[%c0_106, %c0_107], %389 {strides = array<i32>} : memref<8x128xf32, #tpu.memory_space<vmem>>, vector<8x128xf32>,
      %c0_108 = arith.constant 0 : index
      %c0_109 = arith.constant 0 : index
      %411 = vector.load %arg9[%c0_108, %c0_109] : memref<8x128xf32, #tpu.memory_space<vmem>>, vector<8x128xf32>
      tpu.vector_store %arg9[%c0_108, %c0_109], %405 {strides = array<i32>} : memref<8x128xf32, #tpu.memory_space<vmem>>, vector<8x128xf32>,
      %c0_110 = arith.constant 0 : index
      %c0_111 = arith.constant 0 : index
      %412 = vector.load %arg10[%c0_110, %c0_111] : memref<8x128xf32, #tpu.memory_space<vmem>>, vector<8x128xf32>
      tpu.vector_store %arg10[%c0_110, %c0_111], %408 {strides = array<i32>} : memref<8x128xf32, #tpu.memory_space<vmem>>, vector<8x128xf32>,
    } else {
    }
    return
  }
  func.func @transform_0(%arg0: i32, %arg1: i32, %arg2: memref<1xi32, #tpu.memory_space<smem>>) -> (i32, i32, i32) {
    %c0_i32 = arith.constant 0 : i32
    %c0_i32_0 = arith.constant 0 : i32
    return %arg1, %arg0, %c0_i32 : i32, i32, i32
  }
  func.func @transform_1(%arg0: i32, %arg1: i32, %arg2: memref<1xi32, #tpu.memory_space<smem>>) -> (i32, i32) {
    %c0_i32 = arith.constant 0 : i32
    %c0_i32_0 = arith.constant 0 : i32
    %c0_i32_1 = arith.constant 0 : i32
    return %c0_i32, %c0_i32_0 : i32, i32
  }
  func.func @transform_2(%arg0: i32, %arg1: i32, %arg2: memref<1xi32, #tpu.memory_space<smem>>) -> (i32, i32) {
    %c0_i32 = arith.constant 0 : i32
    %c0_i32_0 = arith.constant 0 : i32
    return %arg0, %c0_i32 : i32, i32
  }
  func.func @transform_3(%arg0: i32, %arg1: i32, %arg2: memref<1xi32, #tpu.memory_space<smem>>) -> (i32, i32) {
    %c0_i32 = arith.constant 0 : i32
    %c0_i32_0 = arith.constant 0 : i32
    return %arg0, %c0_i32 : i32, i32
  }
  func.func @transform_4(%arg0: i32, %arg1: i32, %arg2: memref<1xi32, #tpu.memory_space<smem>>) -> (i32, i32) {
    %c0_i32 = arith.constant 0 : i32
    %c0_i32_0 = arith.constant 0 : i32
    return %arg0, %c0_i32 : i32, i32
  }
  func.func @transform_5(%arg0: i32, %arg1: i32, %arg2: memref<1xi32, #tpu.memory_space<smem>>) -> (i32, i32, i32) {
    %c0_i32 = arith.constant 0 : i32
    %c0_i32_0 = arith.constant 0 : i32
    return %arg1, %arg0, %c0_i32 : i32, i32, i32
  }
  func.func @transform_6(%arg0: i32, %arg1: i32, %arg2: memref<1xi32, #tpu.memory_space<smem>>) -> (i32, i32) {
    %c0_i32 = arith.constant 0 : i32
    %c0_i32_0 = arith.constant 0 : i32
    return %arg0, %c0_i32 : i32, i32
  }
  func.func @transform_7(%arg0: i32, %arg1: i32, %arg2: memref<1xi32, #tpu.memory_space<smem>>) -> (i32, i32) {
    %c0_i32 = arith.constant 0 : i32
    %c0_i32_0 = arith.constant 0 : i32
    return %arg0, %c0_i32 : i32, i32
  }
}

</mosaic_0001>

<bundles_post_ra>
// kernel: _sorted_lstm_impl.1
= control target key start
LH: loop header
LB: loop body
LE: loop exit
PB: predicated region body
PF: predicated region fallthrough
CT: control target
= control target key end

     0   :  { %s2512_s0 = inlined_call_operand.<no memory space> [shape: s32[1], index: 0, kind: input, shape index: {}]   ;;  %s2513_s1 = inlined_call_operand.vmem [shape: bf16[8,8,512], index: 1, kind: input, shape index: {}]   ;;  %s2514_s2 = inlined_call_operand.vmem [shape: bf16[128,512], index: 2, kind: input, shape index: {}]   ;;  %s2515_s3 = inlined_call_operand.vmem [shape: s32[8,1], index: 3, kind: input, shape index: {}]   ;;  %s2516_s4 = inlined_call_operand.vmem [shape: f32[8,128], index: 4, kind: input, shape index: {}]   ;;  %s2517_s6 = inlined_call_operand.vmem [shape: f32[8,8,128], index: 6, kind: output, shape index: {0}]   ;;  %s2518_s5 = inlined_call_operand.vmem [shape: f32[8,128], index: 5, kind: input, shape index: {}]   ;;  %s2519_s7 = inlined_call_operand.vmem [shape: f32[8,128], index: 7, kind: output, shape index: {1}]   ;;  %s2520_s8 = inlined_call_operand.vmem [shape: f32[8,128], index: 8, kind: output, shape index: {2}]  }
   0x1   :  { %v32_v0 = vld [vmem:[%s2516_s4] sm:$0xff]  ;;  %p1336_p0 = scmp.gt.s32.totalorder %s2512_s0, 0 }
   0x2   :  { %v34_v1 = vld [vmem:[%s2518_s5] sm:$0xff]  ;;  %33 = vst [vmem:[#allocation2] sm:$0xff] %v32_v0  ;;  %37 = vst [vmem:[%s2519_s7] sm:$0xff] %v32_v0 }
   0x3   :  { %35 = vst [vmem:[#allocation3] sm:$0xff] %v34_v1  ;;  %39 = vst [vmem:[%s2520_s8] sm:$0xff] %v34_v1  ;;  %43 = sbr.rel (%p1336_p0) target bundleno = 13 (0xd), region = 29 }
   0x8   :  { %v1644_v2 = vmov 1e-07  }
   0x9   :  { %44 = vst [vmem:[%s2517_s6] sm:$0xff] %v1644_v2  ;;  %45 = vst [vmem:[%s2517_s6 + $0x8] sm:$0xff] %v1644_v2 }
   0xa   :  { %46 = vst [vmem:[%s2517_s6 + $0x10] sm:$0xff] %v1644_v2  ;;  %47 = vst [vmem:[%s2517_s6 + $0x18] sm:$0xff] %v1644_v2 }
   0xb   :  { %48 = vst [vmem:[%s2517_s6 + $0x20] sm:$0xff] %v1644_v2  ;;  %49 = vst [vmem:[%s2517_s6 + $0x28] sm:$0xff] %v1644_v2 }
   0xc   :  { %50 = vst [vmem:[%s2517_s6 + $0x30] sm:$0xff] %v1644_v2  ;;  %51 = vst [vmem:[%s2517_s6 + $0x38] sm:$0xff] %v1644_v2 }
   0xd PF:  { %p1338_p1 = scmp.le.s32.totalorder %s2512_s0, 0 }
   0xe   :  { %p1381_p2 = scmp.gt.s32.totalorder (!%p1338_p1), %s2512_s0, 1  ;;  %p1389_p3 = scmp.gt.s32.totalorder (!%p1338_p1), %s2512_s0, 2 }
   0xf   :  { %55 = sbr.rel (%p1338_p1) target bundleno = 2062 (0x80e), region = 33  ;;  %p1397_p4 = scmp.gt.s32.totalorder (!%p1338_p1), %s2512_s0, 3 }
  0x10   :  { %p1405_p5 = scmp.gt.s32.totalorder (!%p1338_p1), %s2512_s0, 4  ;;  %p1413_p6 = scmp.gt.s32.totalorder (!%p1338_p1), %s2512_s0, 5 }
  0x11   :  { %p1421_p7 = scmp.gt.s32.totalorder (!%p1338_p1), %s2512_s0, 6  ;;  %p1429_p8 = scmp.gt.s32.totalorder (!%p1338_p1), %s2512_s0, 7 }
  0x14   :  { %v1736_v3 = vld [vmem:[%s2514_s2 + $0xe4] ss:$16 sps:$4 sm:$0xff]   ;;  %v1741_v4 = vld [vmem:[%s2514_s2 + $0xe0] ss:$16 sps:$4 sm:$0xff]   ;;  %v1645_v5 = vmov 0   ;;  %v94_v51 = vld [vmem:[%s2513_s1 + $0x8] sm:$0xff] }
  0x15   :  { %292 = vmatprep.mubr.bf16.mxu0 %v1645_v5  ;;  %333 = vmatprep.mubr.bf16.mxu1 %v1645_v5  ;;  %v1749_v6 = vld [vmem:[%s2514_s2 + $0xc4] ss:$16 sps:$4 sm:$0xff]   ;;  %v1756_v7 = vld [vmem:[%s2514_s2 + $0xc0] ss:$16 sps:$4 sm:$0xff]   ;;  %v1768_v9 = vld [vmem:[%s2514_s2 + $0xec] ss:$16 sps:$4 sm:$0xff]   ;;  %v98_v55 = vunpack.c.h.bf16 %v94_v51  ;;  %v97_v57 = vunpack.c.l.bf16 %v94_v51 }
  0x16   :  { %260 = vmatprep.subr.bf16.mxu0 %v1736_v3  ;;  %1433 = vset.pattern.permute.xlu0 %v1645_v5  ;;  %v1763_v8 = vld [vmem:[%s2514_s2 + $0xa4] ss:$16 sps:$4 sm:$0xff]   ;;  %v1773_v10 = vld [vmem:[%s2514_s2 + $0xe8] ss:$16 sps:$4 sm:$0xff]   ;;  %v1779_v11 = vld [vmem:[%s2514_s2 + $0xa0] ss:$16 sps:$4 sm:$0xff]  }
  0x17   :  { %261 = vmatpush1.bf16.msra.mxu0 %v1741_v4  ;;  %1434 = vset.pattern.permute.xlu1 %v1645_v5  ;;  %v1786_v12 = vld [vmem:[%s2514_s2 + $0x84] ss:$16 sps:$4 sm:$0xff]   ;;  %v1792_v13 = vld [vmem:[%s2514_s2 + $0xcc] ss:$16 sps:$4 sm:$0xff]   ;;  %v1797_v14 = vld [vmem:[%s2514_s2 + $0xc8] ss:$16 sps:$4 sm:$0xff]  }
  0x18   :  { %262 = vmatprep.subr.bf16.mxu0 %v1749_v6  ;;  %301 = vmatprep.subr.bf16.mxu1 %v1768_v9  ;;  %v1804_v15 = vld [vmem:[%s2514_s2 + $0x80] ss:$16 sps:$4 sm:$0xff]   ;;  %v1809_v16 = vld [vmem:[%s2514_s2 + $0x64] ss:$16 sps:$4 sm:$0xff]   ;;  %v1814_v17 = vld [vmem:[%s2514_s2 + $0xac] ss:$16 sps:$4 sm:$0xff]  }
  0x19   :  { %302 = vmatpush1.bf16.msra.mxu1 %v1773_v10  ;;  %v1821_v18 = vld [vmem:[%s2514_s2 + $0xa8] ss:$16 sps:$4 sm:$0xff]   ;;  %v1827_v19 = vld [vmem:[%s2514_s2 + $0x8c] ss:$16 sps:$4 sm:$0xff]   ;;  %v1833_v20 = vld [vmem:[%s2514_s2 + $0x60] ss:$16 sps:$4 sm:$0xff]  }
  0x1a   :  { %303 = vmatprep.subr.bf16.mxu1 %v1792_v13  ;;  %v1839_v21 = vld [vmem:[%s2514_s2 + $0x44] ss:$16 sps:$4 sm:$0xff]   ;;  %v1845_v22 = vld [vmem:[%s2514_s2 + $0x88] ss:$16 sps:$4 sm:$0xff]   ;;  %v1851_v23 = vld [vmem:[%s2514_s2 + $0x6c] ss:$16 sps:$4 sm:$0xff]  }
  0x1b   :  { %263 = vmatpush1.bf16.msra.mxu0 %v1756_v7  ;;  %v1856_v24 = vld [vmem:[%s2514_s2 + $0x40] ss:$16 sps:$4 sm:$0xff]   ;;  %v1862_v25 = vld [vmem:[%s2514_s2 + $0x24] ss:$16 sps:$4 sm:$0xff]   ;;  %v1869_v26 = vld [vmem:[%s2514_s2 + $0x68] ss:$16 sps:$4 sm:$0xff]  }
  0x1c   :  { %264 = vmatprep.subr.bf16.mxu0 %v1763_v8  ;;  %v1875_v27 = vld [vmem:[%s2514_s2 + $0x4c] ss:$16 sps:$4 sm:$0xff]   ;;  %v1880_v28 = vld [vmem:[%s2515_s3] sm:$0xff]  ;;  %v1900_v32 = vld [vmem:[%s2514_s2 + $0x48] ss:$16 sps:$4 sm:$0xff]  }
  0x1d   :  { %304 = vmatpush1.bf16.msra.mxu1 %v1797_v14  ;;  %vm1374_vm0 = vcmp.gt.s32.totalorder %v1880_v28, 0  ;;  %v1887_v29 = vld [vmem:[%s2514_s2 + $0x20] ss:$16 sps:$4 sm:$0xff]   ;;  %v1894_v31 = vld [vmem:[%s2514_s2 + $0x4] ss:$16 sps:$4 sm:$0xff]   ;;  %vm1380_vm1 = vcmp.gt.s32.totalorder %v1880_v28, 1 }
  0x1e   :  { %305 = vmatprep.subr.bf16.mxu1 %v1814_v17  ;;  %v372_v30 = vsel %vm1374_vm0, 1, %v1645_v5  ;;  %v1906_v33 = vld [vmem:[%s2514_s2 + $0x2c] ss:$16 sps:$4 sm:$0xff]   ;;  %v1912_v34 = vld [vmem:[%s2514_s2] ss:$16 sps:$4 sm:$0xff]   ;;  %v504_v40 = vsel %vm1380_vm1, 1, %v1645_v5 }
  0x1f   :  { %265 = vmatpush1.bf16.msra.mxu0 %v1779_v11  ;;  %374 = vperm.xlu0 %1433, %v372_v30   ;;  %v89_v35 = vld [vmem:[#allocation2] sm:$0xff]  ;;  %v1919_v36 = vld [vmem:[%s2514_s2 + $0x28] ss:$16 sps:$4 sm:$0xff]   ;;  %v1925_v37 = vld [vmem:[%s2514_s2 + $0xc] ss:$16 sps:$4 sm:$0xff]   ;;  %vm1388_vm3 = vcmp.gt.s32.totalorder %v1880_v28, 2 }
  0x20   :  { %266 = vmatprep.subr.bf16.mxu0 %v1786_v12  ;;  %v99_v38 = vpack.c.bf16 %v89_v35, %v89_v35  ;;  %v1932_v39 = vld [vmem:[%s2514_s2 + $0x8] ss:$16 sps:$4 sm:$0xff]   ;;  %v93_v41 = vld [vmem:[%s2513_s1] sm:$0xff]  ;;  %s503_s17 = scalar_select %p1381_p2, 0.0, 1e-07 }
  0x21   :  { %306 = vmatpush1.bf16.msra.mxu1 %v1821_v18  ;;  %v95_v42 = vunpack.c.l.bf16 %v93_v41  ;;  %v96_v43 = vunpack.c.h.bf16 %v93_v41  ;;  %vm1396_vm5 = vcmp.gt.s32.totalorder %v1880_v28, 3  ;;  %s637_s26 = scalar_select %p1389_p3, 0.0, 1e-07  ;;  %vm1404_vm7 = vcmp.gt.s32.totalorder %v1880_v28, 4 }
  0x22   :  { %307 = vmatprep.subr.bf16.mxu1 %v1827_v19  ;;  %s771_s13 = scalar_select %p1397_p4, 0.0, 1e-07  ;;  %vm1412_vm9 = vcmp.gt.s32.totalorder %v1880_v28, 5 }
  0x23   :  { %267 = vmatpush1.bf16.msra.mxu0 %v1804_v15  ;;  %506 = vperm.xlu0 %1433, %v504_v40   ;;  %s905_s22 = scalar_select %p1405_p5, 0.0, 1e-07 }
  0x24   :  { %268 = vmatprep.subr.bf16.mxu0 %v1809_v16  ;;  %s1039_s14 = scalar_select %p1413_p6, 0.0, 1e-07 }
  0x25   :  { %308 = vmatpush1.bf16.msra.mxu1 %v1845_v22  ;;  %s1173_s30 = scalar_select %p1421_p7, 0.0, 1e-07 }
  0x26   :  { %309 = vmatprep.subr.bf16.mxu1 %v1851_v23  ;;  %s1307_s5 = scalar_select %p1429_p8, 0.0, 1e-07 }
  0x27   :  { %269 = vmatpush1.bf16.msra.mxu0 %v1833_v20 }
  0x28   :  { %270 = vmatprep.subr.bf16.mxu0 %v1839_v21 }
  0x29   :  { %310 = vmatpush1.bf16.msra.mxu1 %v1869_v26 }
  0x2a   :  { %311 = vmatprep.subr.bf16.mxu1 %v1875_v27 }
  0x2b   :  { %271 = vmatpush1.bf16.msra.mxu0 %v1856_v24 }
  0x2c   :  { %272 = vmatprep.subr.bf16.mxu0 %v1862_v25 }
  0x2d   :  { %312 = vmatpush1.bf16.msra.mxu1 %v1900_v32 }
  0x2e   :  { %313 = vmatprep.subr.bf16.mxu1 %v1906_v33 }
  0x2f   :  { %273 = vmatpush1.bf16.msra.mxu0 %v1887_v29 }
  0x30   :  { %274 = vmatprep.subr.bf16.mxu0 %v1894_v31 }
  0x31   :  { %314 = vmatpush1.bf16.msra.mxu1 %v1919_v36 }
  0x32   :  { %315 = vmatprep.subr.bf16.mxu1 %v1925_v37 }
  0x33   :  { %275 = vmatpush1.bf16.msra.mxu0 %v1912_v34 }
  0x34   :  { %390 = vmatprep.subr.bf16.mxu0 %v1736_v3 }
  0x35   :  { %316 = vmatpush1.bf16.msra.mxu1 %v1932_v39 }
  0x36   :  { %293 = vmatmul.mubr.bf16.vlgmr.msra.gmra.mxu0 %v99_v38  ;;  %431 = vmatprep.subr.bf16.mxu1 %v1768_v9 }
  0x37   :  { %391 = vmatpush1.bf16.msra.mxu0 %v1741_v4  ;;  %422 = vmatprep.mubr.bf16.mxu0 %v1645_v5 }
  0x38   :  { %392 = vmatprep.subr.bf16.mxu0 %v1749_v6  ;;  %334 = vmatmul.mubr.bf16.vlgmr.msra.gmra.mxu1 %v99_v38  ;;  %v90_v38 = vld [vmem:[#allocation3] sm:$0xff] }
  0x39   :  { %432 = vmatpush1.bf16.msra.mxu1 %v1773_v10  ;;  %463 = vmatprep.mubr.bf16.mxu1 %v1645_v5 }
  0x3a   :  { %433 = vmatprep.subr.bf16.mxu1 %v1792_v13 }
  0x3b   :  { %393 = vmatpush1.bf16.msra.mxu0 %v1756_v7 }
  0x3c   :  { %394 = vmatprep.subr.bf16.mxu0 %v1763_v8 }
  0x3d   :  { %434 = vmatpush1.bf16.msra.mxu1 %v1797_v14 }
  0x3e   :  { %435 = vmatprep.subr.bf16.mxu1 %v1814_v17 }
  0x3f   :  { %395 = vmatpush1.bf16.msra.mxu0 %v1779_v11 }
  0x40   :  { %396 = vmatprep.subr.bf16.mxu0 %v1786_v12 }
  0x41   :  { %436 = vmatpush1.bf16.msra.mxu1 %v1821_v18 }
  0x42   :  { %437 = vmatprep.subr.bf16.mxu1 %v1827_v19 }
  0x43   :  { %397 = vmatpush1.bf16.msra.mxu0 %v1804_v15 }
  0x44   :  { %398 = vmatprep.subr.bf16.mxu0 %v1809_v16 }
  0x45   :  { %438 = vmatpush1.bf16.msra.mxu1 %v1845_v22 }
  0x46   :  { %439 = vmatprep.subr.bf16.mxu1 %v1851_v23 }
  0x47   :  { %399 = vmatpush1.bf16.msra.mxu0 %v1833_v20 }
  0x48   :  { %400 = vmatprep.subr.bf16.mxu0 %v1839_v21 }
  0x49   :  { %440 = vmatpush1.bf16.msra.mxu1 %v1869_v26 }
  0x4a   :  { %441 = vmatprep.subr.bf16.mxu1 %v1875_v27 }
  0x4b   :  { %401 = vmatpush1.bf16.msra.mxu0 %v1856_v24 }
  0x4c   :  { %402 = vmatprep.subr.bf16.mxu0 %v1862_v25 }
  0x4d   :  { %442 = vmatpush1.bf16.msra.mxu1 %v1900_v32 }
  0x4e   :  { %443 = vmatprep.subr.bf16.mxu1 %v1906_v33 }
  0x4f   :  { %403 = vmatpush1.bf16.msra.mxu0 %v1887_v29 }
  0x50   :  { %404 = vmatprep.subr.bf16.mxu0 %v1894_v31 }
  0x51   :  { %444 = vmatpush1.bf16.msra.mxu1 %v1919_v36 }
  0x52   :  { %445 = vmatprep.subr.bf16.mxu1 %v1925_v37 }
  0x53   :  { %405 = vmatpush1.bf16.msra.mxu0 %v1912_v34 }
  0x54   :  { %524 = vmatprep.subr.bf16.mxu0 %v1736_v3 }
  0x55   :  { %446 = vmatpush1.bf16.msra.mxu1 %v1932_v39 }
  0x56   :  { %565 = vmatprep.subr.bf16.mxu1 %v1768_v9 }
  0xf6   :  { %v294_v44 = vpop.f32.mrf.mxu0 }
  0xf7   :  { %v342_v45 = vadd.f32 %v294_v44, %v95_v42 }
  0xf8   :  { %v296_v46 = vpop.f32.mrf.mxu0  ;;  %v335_v52 = vpop.f32.mrf.mxu1 }
  0xf9   :  { %v1371_v47 = vmul.f32 -1.442695, %v342_v45  ;;  %v343_v48 = vadd.f32 %v296_v46, %v96_v43  ;;  %v344_v60 = vadd.f32 %v335_v52, %v97_v57  ;;  %v1983_v46 = vpop.permute.xlu0 %374 }
  0xfa   :  { %v298_v49 = vpop.f32.mrf.mxu0  ;;  %v337_v54 = vpop.f32.mrf.mxu1  ;;  %vm376_vm2 = vcmp.eq.s32.totalorder %v1983_v46, 1  ;;  %v772_v46 = vsel %vm1396_vm5, 1, %v1645_v5 }
  0xfb   :  { %1483 = vpow2.f32 %v1371_v47  ;;  %v1372_v50 = vmul.f32 -1.442695, %v343_v48  ;;  %v345_v59 = vadd.f32 %v337_v54, %v98_v55  ;;  %v91_v48 = vld [vmem:[%s2519_s7] sm:$0xff]  ;;  %v1375_v54 = vld [vmem:[%s2513_s1 + $0x10] sm:$0xff] }
  0xfc   :  { %v299_v53 = vpop.f32.mrf.mxu0  ;;  %v339_v56 = vpop.f32.mrf.mxu1  ;;  %v385_v55 = vunpack.c.l.bf16 %v1375_v54 }
  0xfd   :  { %1485 = vpow2.f32 %v1372_v50  ;;  %v1373_v61 = vmul.f32 -1.442695, %v345_v59  ;;  %v638_v53 = vsel %vm1388_vm3, 1, %v1645_v5  ;;  %v386_v56 = vunpack.c.h.bf16 %v1375_v54 }
  0xfe   :  { %v340_v58 = vpop.f32.mrf.mxu1  ;;  %1487 = vtanh.f32 %v344_v60  ;;  %640 = vperm.xlu1 %1434, %v638_v53  }
  0xff   :  { %1489 = vpow2.f32 %v1373_v61 }
 0x102   :  { %774 = vperm.xlu1 %1434, %v772_v46  }
 0x108   :  { %v1484_v62 = vpop.eup %1483 }
 0x109   :  { %v349_v63 = vadd.f32 1.0, %v1484_v62 }
 0x10a   :  { %v1486_v0 = vpop.eup %1485 }
 0x10b   :  { %1491 = vrcp.f32 %v349_v63  ;;  %v355_v1 = vadd.f32 1.0, %v1486_v0  ;;  %v1488_v2 = vpop.eup %1487 }
 0x10c   :  { %v1490_v30 = vpop.eup %1489 }
 0x10d   :  { %1493 = vrcp.f32 %v355_v1  ;;  %v362_v41 = vadd.f32 1.0, %v1490_v30 }
 0x10f   :  { %1495 = vrcp.f32 %v362_v41 }
 0x118   :  { %v1492_v35 = vpop.eup %1491 }
 0x119   :  { %v366_v43 = vmul.f32 %v1492_v35, %v1488_v2 }
 0x11a   :  { %v1494_v40 = vpop.eup %1493 }
 0x11b   :  { %v365_v42 = vmul.f32 %v1494_v40, %v90_v38  ;;  %v1376_v38 = vld [vmem:[%s2513_s1 + $0x18] sm:$0xff] }
 0x11c   :  { %v1496_v45 = vpop.eup %1495  ;;  %v388_v40 = vunpack.c.h.bf16 %v1376_v38 }
 0x11d   :  { %v1980_v44 = vadd.f32 %v366_v43, %v365_v42  ;;  %v387_v42 = vunpack.c.l.bf16 %v1376_v38 }
 0x11f   :  { %1497 = vtanh.f32 %v1980_v44 }
 0x12c   :  { %v1498_v47 = vpop.eup %1497 }
 0x12d   :  { %v369_v49 = vmul.f32 %v1498_v47, %v1496_v45 }
 0x12f   :  { %v377_v50 = vsel %vm376_vm2, %v369_v49, 0.0  ;;  %v1993_v51 = vsel %vm376_vm2, %v369_v49, %v91_v48  ;;  %v389_v52 = vpack.c.bf16 %v369_v49, %v369_v49 }
 0x130   :  { %378 = vst [vmem:[%s2517_s6] sm:$0xff] %v377_v50 }
 0x131   :  { %423 = vmatmul.mubr.bf16.vlgmr.msra.gmra.mxu0 %v389_v52  ;;  %464 = vmatmul.mubr.bf16.vlgmr.msra.gmra.mxu1 %v389_v52 }
 0x132   :  { %525 = vmatpush1.bf16.msra.mxu0 %v1741_v4  ;;  %566 = vmatpush1.bf16.msra.mxu1 %v1773_v10 }
 0x133   :  { %526 = vmatprep.subr.bf16.mxu0 %v1749_v6  ;;  %567 = vmatprep.subr.bf16.mxu1 %v1792_v13 }
 0x134   :  { %556 = vmatprep.mubr.bf16.mxu0 %v1645_v5  ;;  %597 = vmatprep.mubr.bf16.mxu1 %v1645_v5 }
 0x136   :  { %527 = vmatpush1.bf16.msra.mxu0 %v1756_v7  ;;  %568 = vmatpush1.bf16.msra.mxu1 %v1797_v14 }
 0x137   :  { %528 = vmatprep.subr.bf16.mxu0 %v1763_v8  ;;  %569 = vmatprep.subr.bf16.mxu1 %v1814_v17 }
 0x13a   :  { %529 = vmatpush1.bf16.msra.mxu0 %v1779_v11  ;;  %570 = vmatpush1.bf16.msra.mxu1 %v1821_v18 }
 0x13b   :  { %530 = vmatprep.subr.bf16.mxu0 %v1786_v12  ;;  %571 = vmatprep.subr.bf16.mxu1 %v1827_v19 }
 0x13e   :  { %531 = vmatpush1.bf16.msra.mxu0 %v1804_v15  ;;  %572 = vmatpush1.bf16.msra.mxu1 %v1845_v22 }
 0x13f   :  { %532 = vmatprep.subr.bf16.mxu0 %v1809_v16  ;;  %573 = vmatprep.subr.bf16.mxu1 %v1851_v23 }
 0x142   :  { %533 = vmatpush1.bf16.msra.mxu0 %v1833_v20  ;;  %574 = vmatpush1.bf16.msra.mxu1 %v1869_v26 }
 0x143   :  { %534 = vmatprep.subr.bf16.mxu0 %v1839_v21  ;;  %575 = vmatprep.subr.bf16.mxu1 %v1875_v27 }
 0x146   :  { %535 = vmatpush1.bf16.msra.mxu0 %v1856_v24  ;;  %576 = vmatpush1.bf16.msra.mxu1 %v1900_v32 }
 0x147   :  { %536 = vmatprep.subr.bf16.mxu0 %v1862_v25  ;;  %577 = vmatprep.subr.bf16.mxu1 %v1906_v33 }
 0x14a   :  { %537 = vmatpush1.bf16.msra.mxu0 %v1887_v29  ;;  %578 = vmatpush1.bf16.msra.mxu1 %v1919_v36 }
 0x14b   :  { %538 = vmatprep.subr.bf16.mxu0 %v1894_v31  ;;  %579 = vmatprep.subr.bf16.mxu1 %v1925_v37 }
 0x14e   :  { %539 = vmatpush1.bf16.msra.mxu0 %v1912_v34  ;;  %580 = vmatpush1.bf16.msra.mxu1 %v1932_v39 }
 0x14f   :  { %658 = vmatprep.subr.bf16.mxu0 %v1736_v3  ;;  %699 = vmatprep.subr.bf16.mxu1 %v1768_v9 }
 0x1f1   :  { %v424_v57 = vpop.f32.mrf.mxu0  ;;  %v465_v58 = vpop.f32.mrf.mxu1 }
 0x1f2   :  { %v472_v59 = vadd.f32 %v424_v57, %v385_v55  ;;  %v474_v47 = vadd.f32 %v465_v58, %v387_v42  ;;  %v507_v55 = vpop.permute.xlu0 %506 }
 0x1f3   :  { %v426_v60 = vpop.f32.mrf.mxu0  ;;  %v467_v61 = vpop.f32.mrf.mxu1  ;;  %vm508_vm4 = vcmp.eq.s32.totalorder %v507_v55, 1 }
 0x1f4   :  { %v1377_v62 = vmul.f32 -1.442695, %v472_v59  ;;  %v473_v63 = vadd.f32 %v426_v60, %v386_v56  ;;  %v475_v41 = vadd.f32 %v467_v61, %v388_v40  ;;  %v92_v59 = vld [vmem:[%s2520_s8] sm:$0xff] }
 0x1f5   :  { %v428_v0 = vpop.f32.mrf.mxu0  ;;  %v469_v1 = vpop.f32.mrf.mxu1 }
 0x1f6   :  { %1499 = vpow2.f32 %v1377_v62  ;;  %v1378_v2 = vmul.f32 -1.442695, %v473_v63  ;;  %v1379_v43 = vmul.f32 -1.442695, %v475_v41  ;;  %v380_v62 = vsel %vm376_vm2, %v1980_v44, %v92_v59 }
 0x1f7   :  { %v429_v30 = vpop.f32.mrf.mxu0  ;;  %v470_v35 = vpop.f32.mrf.mxu1 }
 0x1f8   :  { %1501 = vpow2.f32 %v1378_v2  ;;  %v509_v2 = vstv %s503_s17 }
 0x1f9   :  { %1503 = vpow2.f32 %v1379_v43 }
 0x203   :  { %v1500_v45 = vpop.eup %1499 }
 0x204   :  { %v479_v48 = vadd.f32 1.0, %v1500_v45 }
 0x205   :  { %v1502_v49 = vpop.eup %1501 }
 0x206   :  { %1505 = vrcp.f32 %v479_v48  ;;  %v485_v50 = vadd.f32 1.0, %v1502_v49  ;;  %v1504_v52 = vpop.eup %1503 }
 0x207   :  { %1507 = vtanh.f32 %v474_v47  ;;  %v492_v57 = vadd.f32 1.0, %v1504_v52 }
 0x208   :  { %1509 = vrcp.f32 %v485_v50 }
 0x209   :  { %1511 = vrcp.f32 %v492_v57  ;;  %v1384_v57 = vld [vmem:[%s2513_s1 + $0x28] sm:$0xff] }
 0x20a   :  { %v522_v59 = vunpack.c.h.bf16 %v1384_v57 }
 0x213   :  { %v1506_v53 = vpop.eup %1505 }
 0x214   :  { %v1508_v54 = vpop.eup %1507 }
 0x215   :  { %v1510_v56 = vpop.eup %1509  ;;  %v496_v58 = vmul.f32 %v1508_v54, %v1506_v53 }
 0x216   :  { %v495_v60 = vmul.f32 %v1510_v56, %v1980_v44  ;;  %v1512_v0 = vpop.eup %1511 }
 0x218   :  { %v2044_v61 = vadd.f32 %v496_v58, %v495_v60  ;;  %v521_v58 = vunpack.c.l.bf16 %v1384_v57 }
 0x21a   :  { %1513 = vtanh.f32 %v2044_v61  ;;  %v2051_v63 = vsel %vm508_vm4, %v2044_v61, %v380_v62 }
 0x227   :  { %v1514_v1 = vpop.eup %1513 }
 0x228   :  { %v499_v30 = vmul.f32 %v1514_v1, %v1512_v0 }
 0x22a   :  { %v510_v35 = vsel %vm508_vm4, %v499_v30, %v509_v2  ;;  %v2057_v38 = vsel %vm508_vm4, %v499_v30, %v1993_v51  ;;  %v523_v44 = vpack.c.bf16 %v499_v30, %v499_v30  ;;  %v1383_v51 = vld [vmem:[%s2513_s1 + $0x20] sm:$0xff] }
 0x22b   :  { %1382 = vst [vmem:[%s2517_s6 + $0x8] sm:$0xff] %v510_v35  ;;  %v519_v40 = vunpack.c.l.bf16 %v1383_v51  ;;  %v520_v41 = vunpack.c.h.bf16 %v1383_v51 }
 0x22c   :  { %557 = vmatmul.mubr.bf16.vlgmr.msra.gmra.mxu0 %v523_v44  ;;  %598 = vmatmul.mubr.bf16.vlgmr.msra.gmra.mxu1 %v523_v44 }
 0x22d   :  { %659 = vmatpush1.bf16.msra.mxu0 %v1741_v4  ;;  %700 = vmatpush1.bf16.msra.mxu1 %v1773_v10 }
 0x22e   :  { %660 = vmatprep.subr.bf16.mxu0 %v1749_v6  ;;  %701 = vmatprep.subr.bf16.mxu1 %v1792_v13 }
 0x22f   :  { %690 = vmatprep.mubr.bf16.mxu0 %v1645_v5  ;;  %731 = vmatprep.mubr.bf16.mxu1 %v1645_v5 }
 0x231   :  { %661 = vmatpush1.bf16.msra.mxu0 %v1756_v7  ;;  %702 = vmatpush1.bf16.msra.mxu1 %v1797_v14 }
 0x232   :  { %662 = vmatprep.subr.bf16.mxu0 %v1763_v8  ;;  %703 = vmatprep.subr.bf16.mxu1 %v1814_v17 }
 0x235   :  { %663 = vmatpush1.bf16.msra.mxu0 %v1779_v11  ;;  %704 = vmatpush1.bf16.msra.mxu1 %v1821_v18 }
 0x236   :  { %664 = vmatprep.subr.bf16.mxu0 %v1786_v12  ;;  %705 = vmatprep.subr.bf16.mxu1 %v1827_v19 }
 0x239   :  { %665 = vmatpush1.bf16.msra.mxu0 %v1804_v15  ;;  %706 = vmatpush1.bf16.msra.mxu1 %v1845_v22 }
 0x23a   :  { %666 = vmatprep.subr.bf16.mxu0 %v1809_v16  ;;  %707 = vmatprep.subr.bf16.mxu1 %v1851_v23 }
 0x23d   :  { %667 = vmatpush1.bf16.msra.mxu0 %v1833_v20  ;;  %708 = vmatpush1.bf16.msra.mxu1 %v1869_v26 }
 0x23e   :  { %668 = vmatprep.subr.bf16.mxu0 %v1839_v21  ;;  %709 = vmatprep.subr.bf16.mxu1 %v1875_v27 }
 0x241   :  { %669 = vmatpush1.bf16.msra.mxu0 %v1856_v24  ;;  %710 = vmatpush1.bf16.msra.mxu1 %v1900_v32 }
 0x242   :  { %670 = vmatprep.subr.bf16.mxu0 %v1862_v25  ;;  %711 = vmatprep.subr.bf16.mxu1 %v1906_v33 }
 0x245   :  { %671 = vmatpush1.bf16.msra.mxu0 %v1887_v29  ;;  %712 = vmatpush1.bf16.msra.mxu1 %v1919_v36 }
 0x246   :  { %672 = vmatprep.subr.bf16.mxu0 %v1894_v31  ;;  %713 = vmatprep.subr.bf16.mxu1 %v1925_v37 }
 0x249   :  { %673 = vmatpush1.bf16.msra.mxu0 %v1912_v34  ;;  %714 = vmatpush1.bf16.msra.mxu1 %v1932_v39 }
 0x24a   :  { %792 = vmatprep.subr.bf16.mxu0 %v1736_v3  ;;  %833 = vmatprep.subr.bf16.mxu1 %v1768_v9 }
 0x2ec   :  { %v558_v42 = vpop.f32.mrf.mxu0  ;;  %v599_v43 = vpop.f32.mrf.mxu1 }
 0x2ed   :  { %v606_v45 = vadd.f32 %v558_v42, %v519_v40  ;;  %v608_v1 = vadd.f32 %v599_v43, %v521_v58  ;;  %v641_v40 = vpop.permute.xlu1 %640 }
 0x2ee   :  { %v560_v47 = vpop.f32.mrf.mxu0  ;;  %v601_v48 = vpop.f32.mrf.mxu1  ;;  %vm642_vm6 = vcmp.eq.s32.totalorder %v641_v40, 1 }
 0x2ef   :  { %v1385_v49 = vmul.f32 -1.442695, %v606_v45  ;;  %v607_v50 = vadd.f32 %v560_v47, %v520_v41  ;;  %v609_v60 = vadd.f32 %v601_v48, %v522_v59 }
 0x2f0   :  { %v562_v52 = vpop.f32.mrf.mxu0  ;;  %v603_v53 = vpop.f32.mrf.mxu1 }
 0x2f1   :  { %1515 = vpow2.f32 %v1385_v49  ;;  %v1386_v54 = vmul.f32 -1.442695, %v607_v50  ;;  %v1387_v62 = vmul.f32 -1.442695, %v609_v60  ;;  %v643_v52 = vstv %s637_s26 }
 0x2f2   :  { %v563_v55 = vpop.f32.mrf.mxu0  ;;  %v604_v56 = vpop.f32.mrf.mxu1 }
 0x2f3   :  { %1517 = vpow2.f32 %v1386_v54 }
 0x2f4   :  { %1519 = vpow2.f32 %v1387_v62 }
 0x2fe   :  { %v1516_v0 = vpop.eup %1515 }
 0x2ff   :  { %v613_v2 = vadd.f32 1.0, %v1516_v0 }
 0x300   :  { %v1518_v30 = vpop.eup %1517 }
 0x301   :  { %1521 = vrcp.f32 %v613_v2  ;;  %v619_v35 = vadd.f32 1.0, %v1518_v30  ;;  %v1520_v44 = vpop.eup %1519 }
 0x302   :  { %1523 = vtanh.f32 %v608_v1  ;;  %v626_v42 = vadd.f32 1.0, %v1520_v44 }
 0x303   :  { %1525 = vrcp.f32 %v619_v35 }
 0x304   :  { %1527 = vrcp.f32 %v626_v42 }
 0x30e   :  { %v1522_v46 = vpop.eup %1521 }
 0x30f   :  { %v1524_v51 = vpop.eup %1523 }
 0x310   :  { %v1526_v41 = vpop.eup %1525  ;;  %v630_v47 = vmul.f32 %v1524_v51, %v1522_v46  ;;  %v1392_v51 = vld [vmem:[%s2513_s1 + $0x38] sm:$0xff] }
 0x311   :  { %v629_v45 = vmul.f32 %v1526_v41, %v2044_v61  ;;  %v1528_v49 = vpop.eup %1527  ;;  %v656_v40 = vunpack.c.h.bf16 %v1392_v51  ;;  %v655_v42 = vunpack.c.l.bf16 %v1392_v51 }
 0x313   :  { %v2105_v48 = vadd.f32 %v630_v47, %v629_v45 }
 0x315   :  { %1529 = vtanh.f32 %v2105_v48  ;;  %v2110_v43 = vsel %vm642_vm6, %v2105_v48, %v2051_v63  ;;  %v906_v63 = vsel %vm1404_vm7, 1, %v1645_v5 }
 0x316   :  { %908 = vperm.xlu0 %1433, %v906_v63  }
 0x322   :  { %v1530_v50 = vpop.eup %1529 }
 0x323   :  { %v633_v61 = vmul.f32 %v1530_v50, %v1528_v49 }
 0x325   :  { %v644_v53 = vsel %vm642_vm6, %v633_v61, %v643_v52  ;;  %v2116_v54 = vsel %vm642_vm6, %v633_v61, %v2057_v38  ;;  %v657_v55 = vpack.c.bf16 %v633_v61, %v633_v61  ;;  %v1391_v38 = vld [vmem:[%s2513_s1 + $0x30] sm:$0xff] }
 0x326   :  { %1390 = vst [vmem:[%s2517_s6 + $0x10] sm:$0xff] %v644_v53  ;;  %v653_v56 = vunpack.c.l.bf16 %v1391_v38  ;;  %v654_v57 = vunpack.c.h.bf16 %v1391_v38  ;;  %v775_v38 = vpop.permute.xlu1 %774 }
 0x327   :  { %691 = vmatmul.mubr.bf16.vlgmr.msra.gmra.mxu0 %v657_v55  ;;  %732 = vmatmul.mubr.bf16.vlgmr.msra.gmra.mxu1 %v657_v55  ;;  %vm776_vm8 = vcmp.eq.s32.totalorder %v775_v38, 1  ;;  %v2247_v38 = vld [vmem:[%s2514_s2 + $0xe0] ss:$16 sps:$4 sm:$0xff]  }
 0x328   :  { %793 = vmatpush1.bf16.msra.mxu0 %v1741_v4  ;;  %834 = vmatpush1.bf16.msra.mxu1 %v1773_v10 }
 0x329   :  { %794 = vmatprep.subr.bf16.mxu0 %v1749_v6  ;;  %835 = vmatprep.subr.bf16.mxu1 %v1792_v13 }
 0x32a   :  { %824 = vmatprep.mubr.bf16.mxu0 %v1645_v5  ;;  %865 = vmatprep.mubr.bf16.mxu1 %v1645_v5 }
 0x32c   :  { %795 = vmatpush1.bf16.msra.mxu0 %v1756_v7  ;;  %836 = vmatpush1.bf16.msra.mxu1 %v1797_v14 }
 0x32d   :  { %796 = vmatprep.subr.bf16.mxu0 %v1763_v8  ;;  %837 = vmatprep.subr.bf16.mxu1 %v1814_v17 }
 0x330   :  { %797 = vmatpush1.bf16.msra.mxu0 %v1779_v11  ;;  %838 = vmatpush1.bf16.msra.mxu1 %v1821_v18 }
 0x331   :  { %798 = vmatprep.subr.bf16.mxu0 %v1786_v12  ;;  %839 = vmatprep.subr.bf16.mxu1 %v1827_v19 }
 0x334   :  { %799 = vmatpush1.bf16.msra.mxu0 %v1804_v15  ;;  %840 = vmatpush1.bf16.msra.mxu1 %v1845_v22 }
 0x335   :  { %800 = vmatprep.subr.bf16.mxu0 %v1809_v16  ;;  %841 = vmatprep.subr.bf16.mxu1 %v1851_v23 }
 0x338   :  { %801 = vmatpush1.bf16.msra.mxu0 %v1833_v20  ;;  %842 = vmatpush1.bf16.msra.mxu1 %v1869_v26 }
 0x339   :  { %802 = vmatprep.subr.bf16.mxu0 %v1839_v21  ;;  %843 = vmatprep.subr.bf16.mxu1 %v1875_v27 }
 0x33c   :  { %803 = vmatpush1.bf16.msra.mxu0 %v1856_v24  ;;  %844 = vmatpush1.bf16.msra.mxu1 %v1900_v32 }
 0x33d   :  { %804 = vmatprep.subr.bf16.mxu0 %v1862_v25  ;;  %845 = vmatprep.subr.bf16.mxu1 %v1906_v33 }
 0x340   :  { %805 = vmatpush1.bf16.msra.mxu0 %v1887_v29  ;;  %846 = vmatpush1.bf16.msra.mxu1 %v1919_v36 }
 0x341   :  { %806 = vmatprep.subr.bf16.mxu0 %v1894_v31  ;;  %847 = vmatprep.subr.bf16.mxu1 %v1925_v37 }
 0x344   :  { %807 = vmatpush1.bf16.msra.mxu0 %v1912_v34  ;;  %848 = vmatpush1.bf16.msra.mxu1 %v1932_v39 }
 0x345   :  { %926 = vmatprep.subr.bf16.mxu0 %v1736_v3  ;;  %967 = vmatprep.subr.bf16.mxu1 %v1768_v9 }
 0x3e7   :  { %v692_v59 = vpop.f32.mrf.mxu0  ;;  %v733_v60 = vpop.f32.mrf.mxu1 }
 0x3e8   :  { %v740_v58 = vadd.f32 %v692_v59, %v653_v56  ;;  %v742_v49 = vadd.f32 %v733_v60, %v655_v42 }
 0x3e9   :  { %v694_v62 = vpop.f32.mrf.mxu0  ;;  %v735_v0 = vpop.f32.mrf.mxu1 }
 0x3ea   :  { %v1393_v1 = vmul.f32 -1.442695, %v740_v58  ;;  %v741_v3 = vadd.f32 %v694_v62, %v654_v57  ;;  %v743_v41 = vadd.f32 %v735_v0, %v656_v40 }
 0x3eb   :  { %v696_v2 = vpop.f32.mrf.mxu0  ;;  %v737_v30 = vpop.f32.mrf.mxu1 }
 0x3ec   :  { %1531 = vpow2.f32 %v1393_v1  ;;  %v1394_v35 = vmul.f32 -1.442695, %v741_v3  ;;  %v1395_v45 = vmul.f32 -1.442695, %v743_v41  ;;  %v777_v3 = vstv %s771_s13 }
 0x3ed   :  { %v697_v44 = vpop.f32.mrf.mxu0  ;;  %v738_v46 = vpop.f32.mrf.mxu1 }
 0x3ee   :  { %1533 = vpow2.f32 %v1394_v35  ;;  %v909_v46 = vpop.permute.xlu0 %908 }
 0x3ef   :  { %1535 = vpow2.f32 %v1395_v45  ;;  %vm910_vm10 = vcmp.eq.s32.totalorder %v909_v46, 1 }
 0x3f9   :  { %v1532_v47 = vpop.eup %1531 }
 0x3fa   :  { %v747_v50 = vadd.f32 1.0, %v1532_v47 }
 0x3fb   :  { %v1534_v52 = vpop.eup %1533 }
 0x3fc   :  { %1537 = vrcp.f32 %v747_v50  ;;  %v753_v61 = vadd.f32 1.0, %v1534_v52  ;;  %v1536_v53 = vpop.eup %1535  ;;  %v911_v52 = vstv %s905_s22 }
 0x3fd   :  { %1539 = vtanh.f32 %v742_v49  ;;  %v760_v57 = vadd.f32 1.0, %v1536_v53 }
 0x3fe   :  { %1541 = vrcp.f32 %v753_v61 }
 0x3ff   :  { %1543 = vrcp.f32 %v760_v57  ;;  %v2259_v57 = vld [vmem:[%s2514_s2 + $0xc4] ss:$16 sps:$4 sm:$0xff]  }
 0x409   :  { %v1538_v55 = vpop.eup %1537 }
 0x40a   :  { %v1540_v63 = vpop.eup %1539 }
 0x40b   :  { %v1542_v56 = vpop.eup %1541  ;;  %v764_v58 = vmul.f32 %v1540_v63, %v1538_v55 }
 0x40c   :  { %v763_v59 = vmul.f32 %v1542_v56, %v2105_v48  ;;  %v1544_v0 = vpop.eup %1543  ;;  %v2253_v56 = vld [vmem:[%s2514_s2 + $0xe8] ss:$16 sps:$4 sm:$0xff]  }
 0x40e   :  { %v2164_v62 = vadd.f32 %v764_v58, %v763_v59  ;;  %v2265_v59 = vld [vmem:[%s2514_s2 + $0xcc] ss:$16 sps:$4 sm:$0xff]   ;;  %v2273_v58 = vld [vmem:[%s2514_s2 + $0xc0] ss:$16 sps:$4 sm:$0xff]  }
 0x410   :  { %1545 = vtanh.f32 %v2164_v62  ;;  %v2169_v60 = vsel %vm776_vm8, %v2164_v62, %v2110_v43 }
 0x41d   :  { %v1546_v1 = vpop.eup %1545 }
 0x41e   :  { %v767_v48 = vmul.f32 %v1546_v1, %v1544_v0  ;;  %v2291_v0 = vld [vmem:[%s2514_s2 + $0xac] ss:$16 sps:$4 sm:$0xff]   ;;  %v2297_v1 = vld [vmem:[%s2514_s2 + $0xa0] ss:$16 sps:$4 sm:$0xff]  }
 0x420   :  { %v778_v2 = vsel %vm776_vm8, %v767_v48, %v777_v3  ;;  %v2175_v30 = vsel %vm776_vm8, %v767_v48, %v2116_v54  ;;  %v791_v35 = vpack.c.bf16 %v767_v48, %v767_v48  ;;  %v2303_v3 = vld [vmem:[%s2514_s2 + $0xa8] ss:$16 sps:$4 sm:$0xff]   ;;  %v2309_v48 = vld [vmem:[%s2514_s2 + $0x84] ss:$16 sps:$4 sm:$0xff]  }
 0x421   :  { %1398 = vst [vmem:[%s2517_s6 + $0x18] sm:$0xff] %v778_v2  ;;  %v2315_v2 = vld [vmem:[%s2514_s2 + $0x8c] ss:$16 sps:$4 sm:$0xff]  }
 0x422   :  { %825 = vmatmul.mubr.bf16.vlgmr.msra.gmra.mxu0 %v791_v35  ;;  %866 = vmatmul.mubr.bf16.vlgmr.msra.gmra.mxu1 %v791_v35  ;;  %v2327_v35 = vld [vmem:[%s2514_s2 + $0x88] ss:$16 sps:$4 sm:$0xff]  }
 0x423   :  { %927 = vmatpush1.bf16.msra.mxu0 %v1741_v4  ;;  %968 = vmatpush1.bf16.msra.mxu1 %v1773_v10  ;;  %v2215_v4 = vld [vmem:[%s2514_s2 + $0xe4] ss:$16 sps:$4 sm:$0xff]  }
 0x424   :  { %928 = vmatprep.subr.bf16.mxu0 %v1749_v6  ;;  %969 = vmatprep.subr.bf16.mxu1 %v1792_v13  ;;  %v1040_v6 = vsel %vm1412_vm9, 1, %v1645_v5 }
 0x425   :  { %958 = vmatprep.mubr.bf16.mxu0 %v1645_v5  ;;  %999 = vmatprep.mubr.bf16.mxu1 %v1645_v5 }
 0x426   :  { %1042 = vperm.xlu1 %1434, %v1040_v6   ;;  %v2333_v6 = vld [vmem:[%s2514_s2 + $0x64] ss:$16 sps:$4 sm:$0xff]  }
 0x427   :  { %929 = vmatpush1.bf16.msra.mxu0 %v1756_v7  ;;  %970 = vmatpush1.bf16.msra.mxu1 %v1797_v14  ;;  %v1399_v7 = vld [vmem:[%s2513_s1 + $0x40] sm:$0xff] }
 0x428   :  { %930 = vmatprep.subr.bf16.mxu0 %v1763_v8  ;;  %971 = vmatprep.subr.bf16.mxu1 %v1814_v17  ;;  %v787_v8 = vunpack.c.l.bf16 %v1399_v7  ;;  %v788_v10 = vunpack.c.h.bf16 %v1399_v7  ;;  %v2339_v7 = vld [vmem:[%s2514_s2 + $0x6c] ss:$16 sps:$4 sm:$0xff]  }
 0x42b   :  { %931 = vmatpush1.bf16.msra.mxu0 %v1779_v11  ;;  %972 = vmatpush1.bf16.msra.mxu1 %v1821_v18 }
 0x42c   :  { %932 = vmatprep.subr.bf16.mxu0 %v1786_v12  ;;  %973 = vmatprep.subr.bf16.mxu1 %v1827_v19 }
 0x42f   :  { %933 = vmatpush1.bf16.msra.mxu0 %v1804_v15  ;;  %974 = vmatpush1.bf16.msra.mxu1 %v1845_v22  ;;  %v1400_v22 = vld [vmem:[%s2513_s1 + $0x48] sm:$0xff] }
 0x430   :  { %934 = vmatprep.subr.bf16.mxu0 %v1809_v16  ;;  %975 = vmatprep.subr.bf16.mxu1 %v1851_v23  ;;  %v790_v23 = vunpack.c.h.bf16 %v1400_v22 }
 0x433   :  { %935 = vmatpush1.bf16.msra.mxu0 %v1833_v20  ;;  %976 = vmatpush1.bf16.msra.mxu1 %v1869_v26 }
 0x434   :  { %936 = vmatprep.subr.bf16.mxu0 %v1839_v21  ;;  %977 = vmatprep.subr.bf16.mxu1 %v1875_v27 }
 0x437   :  { %937 = vmatpush1.bf16.msra.mxu0 %v1856_v24  ;;  %978 = vmatpush1.bf16.msra.mxu1 %v1900_v32 }
 0x438   :  { %938 = vmatprep.subr.bf16.mxu0 %v1862_v25  ;;  %979 = vmatprep.subr.bf16.mxu1 %v1906_v33  ;;  %v789_v25 = vunpack.c.l.bf16 %v1400_v22 }
 0x43b   :  { %939 = vmatpush1.bf16.msra.mxu0 %v1887_v29  ;;  %980 = vmatpush1.bf16.msra.mxu1 %v1919_v36 }
 0x43c   :  { %940 = vmatprep.subr.bf16.mxu0 %v1894_v31  ;;  %981 = vmatprep.subr.bf16.mxu1 %v1925_v37 }
 0x43f   :  { %941 = vmatpush1.bf16.msra.mxu0 %v1912_v34  ;;  %982 = vmatpush1.bf16.msra.mxu1 %v1932_v39 }
 0x440   :  { %1060 = vmatprep.subr.bf16.mxu0 %v2215_v4  ;;  %1101 = vmatprep.subr.bf16.mxu1 %v1768_v9 }
 0x4e2   :  { %v826_v11 = vpop.f32.mrf.mxu0  ;;  %v867_v12 = vpop.f32.mrf.mxu1 }
 0x4e3   :  { %v874_v13 = vadd.f32 %v826_v11, %v787_v8  ;;  %v876_v28 = vadd.f32 %v867_v12, %v789_v25  ;;  %v2345_v8 = vld [vmem:[%s2514_s2 + $0x60] ss:$16 sps:$4 sm:$0xff]   ;;  %v2357_v11 = vld [vmem:[%s2514_s2 + $0x44] ss:$16 sps:$4 sm:$0xff]   ;;  %v2363_v12 = vld [vmem:[%s2514_s2 + $0x4c] ss:$16 sps:$4 sm:$0xff]  }
 0x4e4   :  { %v828_v14 = vpop.f32.mrf.mxu0  ;;  %v869_v15 = vpop.f32.mrf.mxu1 }
 0x4e5   :  { %v1401_v16 = vmul.f32 -1.442695, %v874_v13  ;;  %v875_v17 = vadd.f32 %v828_v14, %v788_v10  ;;  %v877_v24 = vadd.f32 %v869_v15, %v790_v23  ;;  %v2351_v10 = vld [vmem:[%s2514_s2 + $0x68] ss:$16 sps:$4 sm:$0xff]   ;;  %v2369_v13 = vld [vmem:[%s2514_s2 + $0x40] ss:$16 sps:$4 sm:$0xff]  }
 0x4e6   :  { %v830_v18 = vpop.f32.mrf.mxu0  ;;  %v871_v9 = vpop.f32.mrf.mxu1  ;;  %v2376_v14 = vld [vmem:[%s2514_s2 + $0x24] ss:$16 sps:$4 sm:$0xff]   ;;  %v2383_v15 = vld [vmem:[%s2514_s2 + $0x20] ss:$16 sps:$4 sm:$0xff]  }
 0x4e7   :  { %1547 = vpow2.f32 %v1401_v16  ;;  %v1402_v19 = vmul.f32 -1.442695, %v875_v17  ;;  %v1403_v26 = vmul.f32 -1.442695, %v877_v24 }
 0x4e8   :  { %v831_v20 = vpop.f32.mrf.mxu0  ;;  %v872_v21 = vpop.f32.mrf.mxu1 }
 0x4e9   :  { %1549 = vpow2.f32 %v1402_v19 }
 0x4ea   :  { %1551 = vpow2.f32 %v1403_v26 }
 0x4f4   :  { %v1548_v27 = vpop.eup %1547 }
 0x4f5   :  { %v881_v29 = vadd.f32 1.0, %v1548_v27 }
 0x4f6   :  { %v1550_v31 = vpop.eup %1549 }
 0x4f7   :  { %1553 = vrcp.f32 %v881_v29  ;;  %v887_v34 = vadd.f32 1.0, %v1550_v31  ;;  %v1552_v43 = vpop.eup %1551  ;;  %v1408_v29 = vld [vmem:[%s2513_s1 + $0x58] sm:$0xff] }
 0x4f8   :  { %1555 = vtanh.f32 %v876_v28  ;;  %v894_v40 = vadd.f32 1.0, %v1552_v43  ;;  %v924_v31 = vunpack.c.h.bf16 %v1408_v29  ;;  %v923_v43 = vunpack.c.l.bf16 %v1408_v29 }
 0x4f9   :  { %1557 = vrcp.f32 %v887_v34 }
 0x4fa   :  { %1559 = vrcp.f32 %v894_v40 }
 0x504   :  { %v1554_v54 = vpop.eup %1553 }
 0x505   :  { %v1556_v44 = vpop.eup %1555 }
 0x506   :  { %v1558_v51 = vpop.eup %1557  ;;  %v898_v42 = vmul.f32 %v1556_v44, %v1554_v54 }
 0x507   :  { %v897_v41 = vmul.f32 %v1558_v51, %v2164_v62  ;;  %v1560_v49 = vpop.eup %1559  ;;  %v2279_v62 = vld [vmem:[%s2514_s2 + $0xc8] ss:$16 sps:$4 sm:$0xff]  }
 0x509   :  { %v2228_v45 = vadd.f32 %v898_v42, %v897_v41 }
 0x50b   :  { %1561 = vtanh.f32 %v2228_v45  ;;  %v2233_v47 = vsel %vm910_vm10, %v2228_v45, %v2169_v60  ;;  %v2285_v60 = vld [vmem:[%s2514_s2 + $0xa4] ss:$16 sps:$4 sm:$0xff]  }
 0x518   :  { %v1562_v50 = vpop.eup %1561 }
 0x519   :  { %v901_v61 = vmul.f32 %v1562_v50, %v1560_v49 }
 0x51b   :  { %v912_v53 = vsel %vm910_vm10, %v901_v61, %v911_v52  ;;  %v2239_v55 = vsel %vm910_vm10, %v901_v61, %v2175_v30  ;;  %v925_v63 = vpack.c.bf16 %v901_v61, %v901_v61  ;;  %v2321_v30 = vld [vmem:[%s2514_s2 + $0x80] ss:$16 sps:$4 sm:$0xff]   ;;  %v1043_v52 = vpop.permute.xlu1 %1042 }
 0x51c   :  { %1406 = vst [vmem:[%s2517_s6 + $0x20] sm:$0xff] %v912_v53  ;;  %vm1044_vm12 = vcmp.eq.s32.totalorder %v1043_v52, 1 }
 0x51d   :  { %959 = vmatmul.mubr.bf16.vlgmr.msra.gmra.mxu0 %v925_v63  ;;  %1000 = vmatmul.mubr.bf16.vlgmr.msra.gmra.mxu1 %v925_v63 }
 0x51e   :  { %1061 = vmatpush1.bf16.msra.mxu0 %v2247_v38  ;;  %1102 = vmatpush1.bf16.msra.mxu1 %v2253_v56 }
 0x51f   :  { %1062 = vmatprep.subr.bf16.mxu0 %v2259_v57  ;;  %1103 = vmatprep.subr.bf16.mxu1 %v2265_v59 }
 0x520   :  { %1092 = vmatprep.mubr.bf16.mxu0 %v1645_v5  ;;  %1133 = vmatprep.mubr.bf16.mxu1 %v1645_v5 }
 0x522   :  { %1063 = vmatpush1.bf16.msra.mxu0 %v2273_v58  ;;  %1104 = vmatpush1.bf16.msra.mxu1 %v2279_v62 }
 0x523   :  { %1064 = vmatprep.subr.bf16.mxu0 %v2285_v60  ;;  %1105 = vmatprep.subr.bf16.mxu1 %v2291_v0 }
 0x526   :  { %1065 = vmatpush1.bf16.msra.mxu0 %v2297_v1  ;;  %1106 = vmatpush1.bf16.msra.mxu1 %v2303_v3 }
 0x527   :  { %1066 = vmatprep.subr.bf16.mxu0 %v2309_v48  ;;  %1107 = vmatprep.subr.bf16.mxu1 %v2315_v2 }
 0x52a   :  { %1067 = vmatpush1.bf16.msra.mxu0 %v2321_v30  ;;  %1108 = vmatpush1.bf16.msra.mxu1 %v2327_v35 }
 0x52b   :  { %1068 = vmatprep.subr.bf16.mxu0 %v2333_v6  ;;  %1109 = vmatprep.subr.bf16.mxu1 %v2339_v7 }
 0x52e   :  { %1069 = vmatpush1.bf16.msra.mxu0 %v2345_v8  ;;  %1110 = vmatpush1.bf16.msra.mxu1 %v2351_v10 }
 0x52f   :  { %1070 = vmatprep.subr.bf16.mxu0 %v2357_v11  ;;  %1111 = vmatprep.subr.bf16.mxu1 %v2363_v12 }
 0x532   :  { %1071 = vmatpush1.bf16.msra.mxu0 %v2369_v13  ;;  %1112 = vmatpush1.bf16.msra.mxu1 %v1900_v32  ;;  %v2390_v32 = vld [vmem:[%s2514_s2 + $0x4] ss:$16 sps:$4 sm:$0xff]  }
 0x533   :  { %1072 = vmatprep.subr.bf16.mxu0 %v2376_v14  ;;  %1113 = vmatprep.subr.bf16.mxu1 %v1906_v33  ;;  %v2397_v33 = vld [vmem:[%s2514_s2] ss:$16 sps:$4 sm:$0xff]  }
 0x536   :  { %1073 = vmatpush1.bf16.msra.mxu0 %v2383_v15  ;;  %1114 = vmatpush1.bf16.msra.mxu1 %v1919_v36  ;;  %v1637_v36 = vld [vmem:[%s2514_s2 + $0xec] ss:$16 sps:$4 sm:$0xff]  }
 0x537   :  { %1074 = vmatprep.subr.bf16.mxu0 %v2390_v32  ;;  %1115 = vmatprep.subr.bf16.mxu1 %v1925_v37  ;;  %v2408_v37 = vld [vmem:[%s2515_s3] sm:$0xff] }
 0x538   :  { %vm1420_vm11 = vcmp.gt.s32.totalorder %v2408_v37, 6  ;;  %vm1428_vm13 = vcmp.gt.s32.totalorder %v2408_v37, 7 }
 0x539   :  { %v1174_v16 = vsel %vm1420_vm11, 1, %v1645_v5 }
 0x53a   :  { %1075 = vmatpush1.bf16.msra.mxu0 %v2397_v33  ;;  %1116 = vmatpush1.bf16.msra.mxu1 %v1932_v39  ;;  %v1407_v39 = vld [vmem:[%s2513_s1 + $0x50] sm:$0xff] }
 0x53b   :  { %1194 = vmatprep.subr.bf16.mxu0 %v2215_v4  ;;  %1235 = vmatprep.subr.bf16.mxu1 %v1637_v36  ;;  %v921_v4 = vunpack.c.l.bf16 %v1407_v39  ;;  %v922_v17 = vunpack.c.h.bf16 %v1407_v39 }
 0x53c   :  { %1176 = vperm.xlu0 %1433, %v1174_v16  }
 0x5dd   :  { %v960_v18 = vpop.f32.mrf.mxu0  ;;  %v1001_v9 = vpop.f32.mrf.mxu1 }
 0x5de   :  { %v1008_v19 = vadd.f32 %v960_v18, %v921_v4  ;;  %v1010_v46 = vadd.f32 %v1001_v9, %v923_v43  ;;  %v1045_v18 = vstv %s1039_s14 }
 0x5df   :  { %v962_v20 = vpop.f32.mrf.mxu0  ;;  %v1003_v21 = vpop.f32.mrf.mxu1 }
 0x5e0   :  { %v1409_v22 = vmul.f32 -1.442695, %v1008_v19  ;;  %v1009_v23 = vadd.f32 %v962_v20, %v922_v17  ;;  %v1011_v34 = vadd.f32 %v1003_v21, %v924_v31 }
 0x5e1   :  { %v964_v24 = vpop.f32.mrf.mxu0  ;;  %v1005_v25 = vpop.f32.mrf.mxu1 }
 0x5e2   :  { %1563 = vpow2.f32 %v1409_v22  ;;  %v1410_v26 = vmul.f32 -1.442695, %v1009_v23  ;;  %v1411_v54 = vmul.f32 -1.442695, %v1011_v34 }
 0x5e3   :  { %v965_v27 = vpop.f32.mrf.mxu0  ;;  %v1006_v28 = vpop.f32.mrf.mxu1 }
 0x5e4   :  { %1565 = vpow2.f32 %v1410_v26  ;;  %v1177_v26 = vpop.permute.xlu0 %1176 }
 0x5e5   :  { %1567 = vpow2.f32 %v1411_v54  ;;  %vm1178_vm14 = vcmp.eq.s32.totalorder %v1177_v26, 1 }
 0x5ef   :  { %v1564_v44 = vpop.eup %1563 }
 0x5f0   :  { %v1015_v51 = vadd.f32 1.0, %v1564_v44 }
 0x5f1   :  { %v1566_v40 = vpop.eup %1565 }
 0x5f2   :  { %1569 = vrcp.f32 %v1015_v51  ;;  %v1021_v41 = vadd.f32 1.0, %v1566_v40  ;;  %v1568_v42 = vpop.eup %1567 }
 0x5f3   :  { %1571 = vtanh.f32 %v1010_v46  ;;  %v1028_v53 = vadd.f32 1.0, %v1568_v42  ;;  %v1179_v46 = vstv %s1173_s30 }
 0x5f4   :  { %1573 = vrcp.f32 %v1021_v41 }
 0x5f5   :  { %1575 = vrcp.f32 %v1028_v53 }
 0x5ff   :  { %v1570_v49 = vpop.eup %1569 }
 0x600   :  { %v1572_v50 = vpop.eup %1571 }
 0x601   :  { %v1574_v61 = vpop.eup %1573  ;;  %v1032_v36 = vmul.f32 %v1572_v50, %v1570_v49  ;;  %v1423_v49 = vld [vmem:[%s2513_s1 + $0x70] sm:$0xff] }
 0x602   :  { %v1031_v63 = vmul.f32 %v1574_v61, %v2228_v45  ;;  %v1576_v4 = vpop.eup %1575  ;;  %v1189_v50 = vunpack.c.l.bf16 %v1423_v49  ;;  %v1190_v52 = vunpack.c.h.bf16 %v1423_v49 }
 0x604   :  { %v2419_v16 = vadd.f32 %v1032_v36, %v1031_v63 }
 0x606   :  { %1577 = vtanh.f32 %v2419_v16  ;;  %v2424_v39 = vsel %vm1044_vm12, %v2419_v16, %v2233_v47  ;;  %v1639_v47 = vld [vmem:[%s2514_s2 + $0x48] ss:$16 sps:$4 sm:$0xff]  }
 0x613   :  { %v1578_v17 = vpop.eup %1577 }
 0x614   :  { %v1035_v45 = vmul.f32 %v1578_v17, %v1576_v4 }
 0x616   :  { %v1046_v9 = vsel %vm1044_vm12, %v1035_v45, %v1045_v18  ;;  %v2430_v19 = vsel %vm1044_vm12, %v1035_v45, %v2239_v55  ;;  %v1059_v20 = vpack.c.bf16 %v1035_v45, %v1035_v45  ;;  %v1640_v55 = vld [vmem:[%s2514_s2 + $0x2c] ss:$16 sps:$4 sm:$0xff]  }
 0x617   :  { %1414 = vst [vmem:[%s2517_s6 + $0x28] sm:$0xff] %v1046_v9 }
 0x618   :  { %1093 = vmatmul.mubr.bf16.vlgmr.msra.gmra.mxu0 %v1059_v20  ;;  %1134 = vmatmul.mubr.bf16.vlgmr.msra.gmra.mxu1 %v1059_v20  ;;  %v1424_v20 = vld [vmem:[%s2513_s1 + $0x78] sm:$0xff] }
 0x619   :  { %1195 = vmatpush1.bf16.msra.mxu0 %v2247_v38  ;;  %1236 = vmatpush1.bf16.msra.mxu1 %v2253_v56  ;;  %v1641_v38 = vld [vmem:[%s2514_s2 + $0x28] ss:$16 sps:$4 sm:$0xff]   ;;  %v1642_v56 = vld [vmem:[%s2514_s2 + $0xc] ss:$16 sps:$4 sm:$0xff]  }
 0x61a   :  { %1196 = vmatprep.subr.bf16.mxu0 %v2259_v57  ;;  %1237 = vmatprep.subr.bf16.mxu1 %v2265_v59  ;;  %v1643_v57 = vld [vmem:[%s2514_s2 + $0x8] ss:$16 sps:$4 sm:$0xff]   ;;  %v1308_v59 = vsel %vm1428_vm13, 1, %v1645_v5 }
 0x61b   :  { %1226 = vmatprep.mubr.bf16.mxu0 %v1645_v5  ;;  %1267 = vmatprep.mubr.bf16.mxu1 %v1645_v5 }
 0x61c   :  { %1310 = vperm.xlu1 %1434, %v1308_v59  }
 0x61d   :  { %1197 = vmatpush1.bf16.msra.mxu0 %v2273_v58  ;;  %1238 = vmatpush1.bf16.msra.mxu1 %v2279_v62  ;;  %v1415_v58 = vld [vmem:[%s2513_s1 + $0x60] sm:$0xff] }
 0x61e   :  { %1198 = vmatprep.subr.bf16.mxu0 %v2285_v60  ;;  %1239 = vmatprep.subr.bf16.mxu1 %v2291_v0  ;;  %v1055_v62 = vunpack.c.l.bf16 %v1415_v58  ;;  %v1056_v60 = vunpack.c.h.bf16 %v1415_v58 }
 0x621   :  { %1199 = vmatpush1.bf16.msra.mxu0 %v2297_v1  ;;  %1240 = vmatpush1.bf16.msra.mxu1 %v2303_v3 }
 0x622   :  { %1200 = vmatprep.subr.bf16.mxu0 %v2309_v48  ;;  %1241 = vmatprep.subr.bf16.mxu1 %v2315_v2 }
 0x625   :  { %1201 = vmatpush1.bf16.msra.mxu0 %v2321_v30  ;;  %1242 = vmatpush1.bf16.msra.mxu1 %v2327_v35 }
 0x626   :  { %1202 = vmatprep.subr.bf16.mxu0 %v2333_v6  ;;  %1243 = vmatprep.subr.bf16.mxu1 %v2339_v7 }
 0x629   :  { %1203 = vmatpush1.bf16.msra.mxu0 %v2345_v8  ;;  %1244 = vmatpush1.bf16.msra.mxu1 %v2351_v10 }
 0x62a   :  { %1204 = vmatprep.subr.bf16.mxu0 %v2357_v11  ;;  %1245 = vmatprep.subr.bf16.mxu1 %v2363_v12  ;;  %v1416_v11 = vld [vmem:[%s2513_s1 + $0x68] sm:$0xff] }
 0x62b   :  { %v1058_v12 = vunpack.c.h.bf16 %v1416_v11 }
 0x62d   :  { %1205 = vmatpush1.bf16.msra.mxu0 %v2369_v13  ;;  %1246 = vmatpush1.bf16.msra.mxu1 %v1639_v47  ;;  %v1192_v47 = vunpack.c.h.bf16 %v1424_v20 }
 0x62e   :  { %1206 = vmatprep.subr.bf16.mxu0 %v2376_v14  ;;  %1247 = vmatprep.subr.bf16.mxu1 %v1640_v55  ;;  %v1057_v14 = vunpack.c.l.bf16 %v1416_v11  ;;  %v1313_v11 = vstv %s1307_s5 }
 0x631   :  { %1207 = vmatpush1.bf16.msra.mxu0 %v2383_v15  ;;  %1248 = vmatpush1.bf16.msra.mxu1 %v1641_v38  ;;  %v1191_v38 = vunpack.c.l.bf16 %v1424_v20 }
 0x632   :  { %1208 = vmatprep.subr.bf16.mxu0 %v2390_v32  ;;  %1249 = vmatprep.subr.bf16.mxu1 %v1642_v56 }
 0x635   :  { %1209 = vmatpush1.bf16.msra.mxu0 %v2397_v33  ;;  %1250 = vmatpush1.bf16.msra.mxu1 %v1643_v57 }
 0x6d8   :  { %v1094_v0 = vpop.f32.mrf.mxu0  ;;  %v1135_v1 = vpop.f32.mrf.mxu1 }
 0x6d9   :  { %v1142_v3 = vadd.f32 %v1094_v0, %v1055_v62  ;;  %v1144_v33 = vadd.f32 %v1135_v1, %v1057_v14 }
 0x6da   :  { %v1096_v48 = vpop.f32.mrf.mxu0  ;;  %v1137_v2 = vpop.f32.mrf.mxu1 }
 0x6db   :  { %v1417_v30 = vmul.f32 -1.442695, %v1142_v3  ;;  %v1143_v35 = vadd.f32 %v1096_v48, %v1056_v60  ;;  %v1145_v13 = vadd.f32 %v1137_v2, %v1058_v12  ;;  %v1311_v48 = vpop.permute.xlu1 %1310 }
 0x6dc   :  { %v1098_v6 = vpop.f32.mrf.mxu0  ;;  %v1139_v7 = vpop.f32.mrf.mxu1  ;;  %vm1312_vm15 = vcmp.eq.s32.totalorder %v1311_v48, 1 }
 0x6dd   :  { %1579 = vpow2.f32 %v1417_v30  ;;  %v1418_v8 = vmul.f32 -1.442695, %v1143_v35  ;;  %v1419_v15 = vmul.f32 -1.442695, %v1145_v13 }
 0x6de   :  { %v1099_v10 = vpop.f32.mrf.mxu0  ;;  %v1140_v5 = vpop.f32.mrf.mxu1 }
 0x6df   :  { %1581 = vpow2.f32 %v1418_v8 }
 0x6e0   :  { %1583 = vpow2.f32 %v1419_v15 }
 0x6ea   :  { %v1580_v32 = vpop.eup %1579 }
 0x6eb   :  { %v1149_v37 = vadd.f32 1.0, %v1580_v32 }
 0x6ec   :  { %v1582_v21 = vpop.eup %1581 }
 0x6ed   :  { %1585 = vrcp.f32 %v1149_v37  ;;  %v1155_v22 = vadd.f32 1.0, %v1582_v21  ;;  %v1584_v23 = vpop.eup %1583 }
 0x6ee   :  { %1587 = vtanh.f32 %v1144_v33  ;;  %v1162_v28 = vadd.f32 1.0, %v1584_v23 }
 0x6ef   :  { %1589 = vrcp.f32 %v1155_v22 }
 0x6f0   :  { %1591 = vrcp.f32 %v1162_v28 }
 0x6fa   :  { %v1586_v24 = vpop.eup %1585 }
 0x6fb   :  { %v1588_v25 = vpop.eup %1587 }
 0x6fc   :  { %v1590_v27 = vpop.eup %1589  ;;  %v1166_v31 = vmul.f32 %v1588_v25, %v1586_v24 }
 0x6fd   :  { %v1165_v29 = vmul.f32 %v1590_v27, %v2419_v16  ;;  %v1592_v54 = vpop.eup %1591 }
 0x6ff   :  { %v1167_v34 = vadd.f32 %v1166_v31, %v1165_v29 }
 0x701   :  { %1593 = vtanh.f32 %v1167_v34  ;;  %v1184_v43 = vsel %vm1178_vm14, %v1167_v34, %v2424_v39 }
 0x70e   :  { %v1594_v44 = vpop.eup %1593 }
 0x70f   :  { %v1169_v51 = vmul.f32 %v1594_v44, %v1592_v54 }
 0x711   :  { %v1180_v40 = vsel %vm1178_vm14, %v1169_v51, %v1179_v46  ;;  %v1183_v41 = vsel %vm1178_vm14, %v1169_v51, %v2430_v19  ;;  %v1193_v42 = vpack.c.bf16 %v1169_v51, %v1169_v51 }
 0x712   :  { %1422 = vst [vmem:[%s2517_s6 + $0x30] sm:$0xff] %v1180_v40 }
 0x713   :  { %1227 = vmatmul.mubr.bf16.vlgmr.msra.gmra.mxu0 %v1193_v42  ;;  %1268 = vmatmul.mubr.bf16.vlgmr.msra.gmra.mxu1 %v1193_v42 }
 0x7d3   :  { %v1228_v61 = vpop.f32.mrf.mxu0  ;;  %v1269_v53 = vpop.f32.mrf.mxu1 }
 0x7d4   :  { %v1276_v63 = vadd.f32 %v1228_v61, %v1189_v50  ;;  %v1278_v59 = vadd.f32 %v1269_v53, %v1191_v38 }
 0x7d5   :  { %v1230_v36 = vpop.f32.mrf.mxu0  ;;  %v1271_v16 = vpop.f32.mrf.mxu1 }
 0x7d6   :  { %v1425_v39 = vmul.f32 -1.442695, %v1276_v63  ;;  %v1277_v4 = vadd.f32 %v1230_v36, %v1190_v52  ;;  %v1279_v55 = vadd.f32 %v1271_v16, %v1192_v47 }
 0x7d7   :  { %v1232_v17 = vpop.f32.mrf.mxu0  ;;  %v1273_v18 = vpop.f32.mrf.mxu1 }
 0x7d8   :  { %1595 = vpow2.f32 %v1425_v39  ;;  %v1426_v45 = vmul.f32 -1.442695, %v1277_v4  ;;  %v1427_v56 = vmul.f32 -1.442695, %v1279_v55 }
 0x7d9   :  { %v1233_v9 = vpop.f32.mrf.mxu0  ;;  %v1274_v19 = vpop.f32.mrf.mxu1 }
 0x7da   :  { %1597 = vpow2.f32 %v1426_v45 }
 0x7db   :  { %1599 = vpow2.f32 %v1427_v56 }
 0x7e5   :  { %v1596_v57 = vpop.eup %1595 }
 0x7e6   :  { %v1283_v58 = vadd.f32 1.0, %v1596_v57 }
 0x7e7   :  { %v1598_v62 = vpop.eup %1597 }
 0x7e8   :  { %1601 = vrcp.f32 %v1283_v58  ;;  %v1289_v60 = vadd.f32 1.0, %v1598_v62  ;;  %v1600_v0 = vpop.eup %1599 }
 0x7e9   :  { %1603 = vtanh.f32 %v1278_v59  ;;  %v1296_v30 = vadd.f32 1.0, %v1600_v0 }
 0x7ea   :  { %1605 = vrcp.f32 %v1289_v60 }
 0x7eb   :  { %1607 = vrcp.f32 %v1296_v30 }
 0x7f5   :  { %v1602_v1 = vpop.eup %1601 }
 0x7f6   :  { %v1604_v3 = vpop.eup %1603 }
 0x7f7   :  { %v1606_v2 = vpop.eup %1605  ;;  %v1300_v6 = vmul.f32 %v1604_v3, %v1602_v1 }
 0x7f8   :  { %v1299_v35 = vmul.f32 %v1606_v2, %v1167_v34  ;;  %v1608_v10 = vpop.eup %1607 }
 0x7fa   :  { %v1301_v7 = vadd.f32 %v1300_v6, %v1299_v35 }
 0x7fc   :  { %1609 = vtanh.f32 %v1301_v7  ;;  %v1318_v8 = vsel %vm1312_vm15, %v1301_v7, %v1184_v43  ;;  %1320 = vst [vmem:[#allocation3] sm:$0xff] %v1301_v7 }
 0x7fd   :  { %1322 = vst [vmem:[%s2520_s8] sm:$0xff] %v1318_v8 }
 0x809   :  { %v1610_v5 = vpop.eup %1609 }
 0x80a   :  { %v1303_v12 = vmul.f32 %v1610_v5, %v1608_v10 }
 0x80c   :  { %v1314_v13 = vsel %vm1312_vm15, %v1303_v12, %v1313_v11  ;;  %v1317_v14 = vsel %vm1312_vm15, %v1303_v12, %v1183_v41  ;;  %1319 = vst [vmem:[#allocation2] sm:$0xff] %v1303_v12 }
 0x80d   :  { %1430 = vst [vmem:[%s2517_s6 + $0x38] sm:$0xff] %v1314_v13  ;;  %1321 = vst [vmem:[%s2519_s7] sm:$0xff] %v1317_v14 }
 0x80e PF:  {}

</bundles_post_ra>
